<compile_context>
chip_gen: v6e
topology: v6e:2x2x1
jax: 0.10.0
libtpu: 0.0.40
codegen_flags: <defaults>
</compile_context>

<pallas_src>
import math
import functools

import jax
import jax.numpy as jnp
from jax.experimental import pallas as pl
from jax.experimental.pallas import tpu as pltpu

_VMEM_LIMIT = 32 * 1024 * 1024            # safe on v5e/v6e (128 MiB) and v7x (64 MiB)
_INV_SQRT2 = 1.0 / math.sqrt(2.0)
_LN_EPS = 1e-5


def _pick_tile(dim, target, align):
    """Largest `align`-aligned divisor of `dim` that is <= target, else `dim`."""
    if dim <= target:
        return dim
    t = (target // align) * align
    while t >= align:
        if dim % t == 0:
            return t
        t -= align
    return dim


def _layer_norm_f32(x_ref, gw_ref, gb_ref):
    x = x_ref[...].astype(jnp.float32)                      # (tm, K)
    mu = jnp.mean(x, axis=-1, keepdims=True)
    xc = x - mu
    var = jnp.mean(xc * xc, axis=-1, keepdims=True)
    return xc * jax.lax.rsqrt(var + _LN_EPS) * gw_ref[...] + gb_ref[...]


def _apply_bias_act(acc, b_ref, activation):
    acc = acc + b_ref[...]
    if activation == "gelu":                                 # exact erf GELU (torch default)
        acc = 0.5 * acc * (1.0 + jax.lax.erf(acc * _INV_SQRT2))
    return acc


# ----------------------------------------------------------------------------
# Kernel 1: fused LayerNorm + matmul (+ bias, optional exact GELU)
#   x block: (tm, K)  (full feature dim per row tile, needed for the LN stats)
#   w block: (K, tn)  streamed over the N grid axis
# ----------------------------------------------------------------------------
def _ln_matmul_cached_kernel(x_ref, w_ref, gw_ref, gb_ref, b_ref, out_ref, h_sc,
                             *, activation):
    # LN result cached in VMEM scratch; recomputed only at the first N tile of
    # each row tile (grid order is i-outer, j-inner).
    @pl.when(pl.program_id(1) == 0)
    def _ln():
        h_sc[...] = _layer_norm_f32(x_ref, gw_ref, gb_ref).astype(h_sc.dtype)

    acc = jnp.dot(h_sc[...], w_ref[...], preferred_element_type=jnp.float32)
    out_ref[...] = _apply_bias_act(acc, b_ref, activation).astype(out_ref.dtype)


def _ln_matmul_kernel(x_ref, w_ref, gw_ref, gb_ref, b_ref, out_ref, *, activation):
    h = _layer_norm_f32(x_ref, gw_ref, gb_ref)
    acc = jnp.dot(h.astype(jnp.bfloat16), w_ref[...],
                  preferred_element_type=jnp.float32)
    out_ref[...] = _apply_bias_act(acc, b_ref, activation).astype(out_ref.dtype)


def ln_matmul(x, w, b, gw, gb, *, activation=None, out_dtype=jnp.bfloat16,
              tm_target=256, tn_target=512, cache_ln=True):
    M, K = x.shape
    _, N = w.shape
    tm = _pick_tile(M, tm_target, 8)
    tn = _pick_tile(N, tn_target, 128)
    grid = (M // tm, N // tn)
    in_specs = [
        pl.BlockSpec((tm, K), lambda i, j: (i, 0)),
        pl.BlockSpec((K, tn), lambda i, j: (0, j)),
        pl.BlockSpec((1, K), lambda i, j: (0, 0)),
        pl.BlockSpec((1, K), lambda i, j: (0, 0)),
        pl.BlockSpec((1, tn), lambda i, j: (0, j)),
    ]
    out_spec = pl.BlockSpec((tm, tn), lambda i, j: (i, j))
    if cache_ln:
        kernel = functools.partial(_ln_matmul_cached_kernel, activation=activation)
        scratch = [pltpu.VMEM((tm, K), jnp.bfloat16)]
        dims = ("parallel", "arbitrary")      # LN scratch carried across the N sweep
    else:
        kernel = functools.partial(_ln_matmul_kernel, activation=activation)
        scratch = []
        dims = ("parallel", "parallel")       # both axes shardable (lm_head path)
    return pl.pallas_call(
        kernel,
        out_shape=jax.ShapeDtypeStruct((M, N), out_dtype),
        grid=grid,
        in_specs=in_specs,
        out_specs=out_spec,
        scratch_shapes=scratch,
        compiler_params=pltpu.CompilerParams(
            dimension_semantics=dims,
            vmem_limit_bytes=_VMEM_LIMIT),
    )(x, w, gw, gb, b)


# ----------------------------------------------------------------------------
# Kernel 2: flash attention with online softmax.
#   q/k/v layout: (B*H, T, D); grid = (B*H, q-tiles, kv-tiles)
#   Tile-local causal mask; fully-masked KV tiles are skipped via pl.when.
# ----------------------------------------------------------------------------
def _flash_attn_kernel(q_ref, k_ref, v_ref, o_ref, m_sc, l_sc, acc_sc,
                       *, scale, tq, tk):
    qi = pl.program_id(1)
    ki = pl.program_id(2)

    @pl.when(ki == 0)
    def _init():
        m_sc[...] = jnp.full_like(m_sc, -jnp.inf)
        l_sc[...] = jnp.zeros_like(l_sc)
        acc_sc[...] = jnp.zeros_like(acc_sc)

    # Skip KV tiles that lie entirely above the causal diagonal.
    @pl.when(ki * tk <= qi * tq + (tq - 1))
    def _update():
        q = q_ref[0]                                         # (tq, D) bf16
        k = k_ref[0]                                         # (tk, D) bf16
        s = jax.lax.dot_general(q, k, (((1,), (1,)), ((), ())),
                                preferred_element_type=jnp.float32) * scale
        # causal keep iff (qi*tq + r) >= (ki*tk + c)  <=>  (r - c) >= ki*tk - qi*tq
        rel = (jax.lax.broadcasted_iota(jnp.int32, (tq, tk), 0)
               - jax.lax.broadcasted_iota(jnp.int32, (tq, tk), 1))
        s = jnp.where(rel >= ki * tk - qi * tq, s, -1e30)    # f32 scores -> -1e30 safe

        m_prev = m_sc[...]
        m_new = jnp.maximum(m_prev, jnp.max(s, axis=-1, keepdims=True))
        alpha = jnp.exp(m_prev - m_new)
        p = jnp.exp(s - m_new)
        l_sc[...] = alpha * l_sc[...] + jnp.sum(p, axis=-1, keepdims=True)
        acc_sc[...] = alpha * acc_sc[...] + jnp.dot(
            p.astype(v_ref.dtype), v_ref[0], preferred_element_type=jnp.float32)
        m_sc[...] = m_new

    @pl.when(ki == pl.num_programs(2) - 1)
    def _finalize():
        inv_l = pl.reciprocal(l_sc[...], approx=True)
        o_ref[0] = (acc_sc[...] * inv_l).astype(o_ref.dtype)


def flash_attention(q, k, v, *, scale, tq_target=256, tk_target=256):
    # TODO(synk): output last dim is the head dim (<128 lanes for GPT-2); a
    # lane-dense (B, T, H*D) output layout would need a per-head inner loop.
    BH, T, D = q.shape
    tq = _pick_tile(T, tq_target, 8)
    tk = _pick_tile(T, tk_target, 8)
    grid = (BH, T // tq, T // tk)
    kernel = functools.partial(_flash_attn_kernel, scale=scale, tq=tq, tk=tk)
    return pl.pallas_call(
        kernel,
        out_shape=jax.ShapeDtypeStruct((BH, T, D), jnp.bfloat16),
        grid=grid,
        in_specs=[
            pl.BlockSpec((1, tq, D), lambda b, qi, ki: (b, qi, 0)),
            pl.BlockSpec((1, tk, D), lambda b, qi, ki: (b, ki, 0)),
            pl.BlockSpec((1, tk, D), lambda b, qi, ki: (b, ki, 0)),
        ],
        out_specs=pl.BlockSpec((1, tq, D), lambda b, qi, ki: (b, qi, 0)),
        scratch_shapes=[
            pltpu.VMEM((tq, 1), jnp.float32),    # running max m
            pltpu.VMEM((tq, 1), jnp.float32),    # running denom l
            pltpu.VMEM((tq, D), jnp.float32),    # running numerator acc
        ],
        compiler_params=pltpu.CompilerParams(
            dimension_semantics=("parallel", "parallel", "arbitrary"),
            vmem_limit_bytes=_VMEM_LIMIT),
    )(q, k, v)


# ----------------------------------------------------------------------------
# Kernel 3: matmul + bias + residual add, K grid axis with f32 accumulator.
# ----------------------------------------------------------------------------
def _matmul_bias_residual_kernel(x_ref, w_ref, b_ref, r_ref, out_ref, acc_ref):
    @pl.when(pl.program_id(2) == 0)
    def _():
        acc_ref[...] = jnp.zeros_like(acc_ref)

    acc_ref[...] += jnp.dot(x_ref[...], w_ref[...],
                            preferred_element_type=jnp.float32)

    @pl.when(pl.program_id(2) == pl.num_programs(2) - 1)
    def _():
        out_ref[...] = (acc_ref[...] + b_ref[...] + r_ref[...]).astype(out_ref.dtype)


def matmul_bias_residual(x, w, b, r, *, tm_target=256, tn_target=512, tk_target=512):
    M, K = x.shape
    _, N = w.shape
    tm = _pick_tile(M, tm_target, 8)
    tn = _pick_tile(N, tn_target, 128)
    tk = _pick_tile(K, tk_target, 128)
    grid = (M // tm, N // tn, K // tk)
    return pl.pallas_call(
        _matmul_bias_residual_kernel,
        out_shape=jax.ShapeDtypeStruct((M, N), jnp.float32),
        grid=grid,
        in_specs=[
            pl.BlockSpec((tm, tk), lambda i, j, k: (i, k)),
            pl.BlockSpec((tk, tn), lambda i, j, k: (k, j)),
            pl.BlockSpec((1, tn), lambda i, j, k: (0, j)),
            pl.BlockSpec((tm, tn), lambda i, j, k: (i, j)),
        ],
        out_specs=pl.BlockSpec((tm, tn), lambda i, j, k: (i, j)),
        scratch_shapes=[pltpu.VMEM((tm, tn), jnp.float32)],
        compiler_params=pltpu.CompilerParams(
            dimension_semantics=("parallel", "parallel", "arbitrary"),
            vmem_limit_bytes=_VMEM_LIMIT),
    )(x, w, b, r)


# ----------------------------------------------------------------------------
# Parameter init (mirrors GPT._init_weights; weights pre-transposed to (in, out),
# stored bf16; tied lm_head weight pre-transposed ONCE to (C, V)).
# ----------------------------------------------------------------------------
def init_params(key, *, vocab_size, block_size, n_layer, n_head, n_embd):
    C = n_embd
    std = 0.02
    std_proj = 0.02 / math.sqrt(2 * n_layer)
    ks = iter(jax.random.split(key, 2 + 4 * n_layer))

    wte = jax.random.normal(next(ks), (vocab_size, C), jnp.float32) * std
    wpe = jax.random.normal(next(ks), (block_size, C), jnp.float32) * std
    params = {
        'wte': wte,                                   # (V, C) f32 for the embedding gather
        'wte_t': wte.T.astype(jnp.bfloat16),          # (C, V) bf16, pre-transposed tied head
        'wpe': wpe,
        'ln_f_w': jnp.ones((1, C), jnp.float32),
        'ln_f_b': jnp.zeros((1, C), jnp.float32),
        'head_b': jnp.zeros((1, vocab_size), jnp.float32),   # lm_head has no bias
        'blocks': [],
    }
    for _ in range(n_layer):
        blk = {
            'ln1_w': jnp.ones((1, C), jnp.float32),
            'ln1_b': jnp.zeros((1, C), jnp.float32),
            'w_qkv': (jax.random.normal(next(ks), (C, 3 * C), jnp.float32) * std).astype(jnp.bfloat16),
            'b_qkv': jnp.zeros((1, 3 * C), jnp.float32),
            'w_proj': (jax.random.normal(next(ks), (C, C), jnp.float32) * std_proj).astype(jnp.bfloat16),
            'b_proj': jnp.zeros((1, C), jnp.float32),
            'ln2_w': jnp.ones((1, C), jnp.float32),
            'ln2_b': jnp.zeros((1, C), jnp.float32),
            'w_fc': (jax.random.normal(next(ks), (C, 4 * C), jnp.float32) * std).astype(jnp.bfloat16),
            'b_fc': jnp.zeros((1, 4 * C), jnp.float32),
            'w_proj2': (jax.random.normal(next(ks), (4 * C, C), jnp.float32) * std_proj).astype(jnp.bfloat16),
            'b_proj2': jnp.zeros((1, C), jnp.float32),
        }
        params['blocks'].append(blk)
    return params


# ----------------------------------------------------------------------------
# Forward pass (inference path: targets=None -> logits for last position only).
# ----------------------------------------------------------------------------
def _gpt_forward_impl(params, idx, *, n_head):
    B, T = idx.shape
    V, C = params['wte'].shape
    H = n_head
    D = C // H
    scale = 1.0 / math.sqrt(D)

    # Embedding gather + positional add (plain-JAX glue; dropout p=0.0 -> identity).
    # TODO(synk): embedding gather stays in XLA; a Pallas DMA-gather adds nothing here.
    tok_emb = jnp.take(params['wte'], idx, axis=0)            # (B, T, C)
    pos_emb = params['wpe'][:T]                               # (T, C)
    x2 = (tok_emb + pos_emb[None, :, :]).astype(jnp.float32).reshape(B * T, C)

    for blk in params['blocks']:
        # ---- attention: ln1 -> qkv proj -> flash attention -> out proj + residual
        qkv = ln_matmul(x2, blk['w_qkv'], blk['b_qkv'], blk['ln1_w'], blk['ln1_b'],
                        activation=None, out_dtype=jnp.bfloat16)      # (B*T, 3C)
        qkv = qkv.reshape(B, T, 3, H, D)                               # lane-aligned head split
        q = qkv[:, :, 0].transpose(0, 2, 1, 3).reshape(B * H, T, D)
        k = qkv[:, :, 1].transpose(0, 2, 1, 3).reshape(B * H, T, D)
        v = qkv[:, :, 2].transpose(0, 2, 1, 3).reshape(B * H, T, D)
        y = flash_attention(q, k, v, scale=scale)                      # (B*H, T, D) bf16
        y = y.reshape(B, H, T, D).transpose(0, 2, 1, 3).reshape(B * T, C)
        x2 = matmul_bias_residual(y, blk['w_proj'], blk['b_proj'], x2)  # (B*T, C) f32

        # ---- MLP: ln2 -> fc + GELU -> proj + residual
        hmid = ln_matmul(x2, blk['w_fc'], blk['b_fc'], blk['ln2_w'], blk['ln2_b'],
                         activation="gelu", out_dtype=jnp.bfloat16)    # (B*T, 4C)
        x2 = matmul_bias_residual(hmid, blk['w_proj2'], blk['b_proj2'], x2)

    # ---- ln_f + weight-tied lm_head on the last position only (streamed over V)
    x_last = x2.reshape(B, T, C)[:, -1, :]                             # (B, C)
    logits = ln_matmul(x_last, params['wte_t'], params['head_b'],
                       params['ln_f_w'], params['ln_f_b'],
                       activation=None, out_dtype=jnp.float32,
                       tn_target=2048, cache_ln=False)                 # (B, V)
    # TODO(synk): training path (targets + cross-entropy loss) not implemented.
    return logits.reshape(B, 1, V), None


gpt_forward = jax.jit(_gpt_forward_impl, static_argnames=("n_head",))


# ----------------------------------------------------------------------------
if __name__ == "__main__":
    # Small config consistent with the module's forward.
    vocab_size = 64
    block_size = 16
    n_layer = 2
    n_head = 4
    n_embd = 32
    B, T = 2, 8

    key = jax.random.PRNGKey(0)
    k_param, k_idx = jax.random.split(key)
    params = init_params(k_param, vocab_size=vocab_size, block_size=block_size,
                         n_layer=n_layer, n_head=n_head, n_embd=n_embd)
    idx = jax.random.randint(k_idx, (B, T), 0, vocab_size, dtype=jnp.int32)

    logits, loss = gpt_forward(params, idx, n_head=n_head)
    logits = jax.block_until_ready(logits)
    assert logits.shape == (B, 1, vocab_size)
    assert bool(jnp.all(jnp.isfinite(logits)))
    print("KERNEL_OK")
</pallas_src>

<mosaic_0001>
module attributes {stable_mosaic.version = 11 : i64} {
  func.func @_flash_attn_kernel(%arg0: i32, %arg1: i32, %arg2: i32, %arg3: memref<1x8x8xbf16, #tpu.memory_space<vmem>>, %arg4: memref<1x8x8xbf16, #tpu.memory_space<vmem>>, %arg5: memref<1x8x8xbf16, #tpu.memory_space<vmem>>, %arg6: memref<1x8x8xbf16, #tpu.memory_space<vmem>>, %arg7: memref<8x1xf32, #tpu.memory_space<vmem>>, %arg8: memref<8x1xf32, #tpu.memory_space<vmem>>, %arg9: memref<8x8xf32, #tpu.memory_space<vmem>>) attributes {dimension_semantics = [#tpu.dimension_semantics<parallel>, #tpu.dimension_semantics<parallel>, #tpu.dimension_semantics<arbitrary>], iteration_bounds = array<i64: 8, 1, 1>, scalar_prefetch = 0 : i64, scratch_operands = 3 : i64, tpu.core_type = #tpu.core_type<tc>, window_params = [{transform_indices = @transform_0, window_bounds = array<i64: 1, 8, 8>}, {transform_indices = @transform_1, window_bounds = array<i64: 1, 8, 8>}, {transform_indices = @transform_2, window_bounds = array<i64: 1, 8, 8>}, {transform_indices = @transform_3, window_bounds = array<i64: 1, 8, 8>}]} {
    %c0_i32 = arith.constant 0 : i32
    %0 = arith.cmpi eq, %arg2, %c0_i32 : i32
    %1 = arith.extui %0 : i1 to i32
    %c0_i32_0 = arith.constant 0 : i32
    %2 = arith.cmpi ne, %1, %c0_i32_0 : i32
    scf.if %2 {
      %cst = arith.constant 0xFF800000 : f32
      %12 = vector.broadcast %cst : f32 to vector<8x1xf32>
      %c0 = arith.constant 0 : index
      %c0_5 = arith.constant 0 : index
      %13 = vector.load %arg7[%c0, %c0_5] : memref<8x1xf32, #tpu.memory_space<vmem>>, vector<8x1xf32>
      tpu.vector_store %arg7[%c0, %c0_5], %12 {strides = array<i32>} : memref<8x1xf32, #tpu.memory_space<vmem>>, vector<8x1xf32>,
      %cst_6 = arith.constant 0.000000e+00 : f32
      %14 = vector.broadcast %cst_6 : f32 to vector<8x1xf32>
      %c0_7 = arith.constant 0 : index
      %c0_8 = arith.constant 0 : index
      %15 = vector.load %arg8[%c0_7, %c0_8] : memref<8x1xf32, #tpu.memory_space<vmem>>, vector<8x1xf32>
      tpu.vector_store %arg8[%c0_7, %c0_8], %14 {strides = array<i32>} : memref<8x1xf32, #tpu.memory_space<vmem>>, vector<8x1xf32>,
      %cst_9 = arith.constant 0.000000e+00 : f32
      %16 = vector.broadcast %cst_9 : f32 to vector<8x8xf32>
      %c0_10 = arith.constant 0 : index
      %c0_11 = arith.constant 0 : index
      %17 = vector.load %arg9[%c0_10, %c0_11] : memref<8x8xf32, #tpu.memory_space<vmem>>, vector<8x8xf32>
      tpu.vector_store %arg9[%c0_10, %c0_11], %16 {strides = array<i32>} : memref<8x8xf32, #tpu.memory_space<vmem>>, vector<8x8xf32>,
    } else {
    }
    %c8_i32 = arith.constant 8 : i32
    %3 = arith.muli %arg2, %c8_i32 : i32
    %c8_i32_1 = arith.constant 8 : i32
    %4 = arith.muli %arg1, %c8_i32_1 : i32
    %c7_i32 = arith.constant 7 : i32
    %5 = arith.addi %4, %c7_i32 : i32
    %6 = arith.cmpi sle, %3, %5 : i32
    %7 = arith.extui %6 : i1 to i32
    %c0_i32_2 = arith.constant 0 : i32
    %8 = arith.cmpi ne, %7, %c0_i32_2 : i32
    scf.if %8 {
      %c0 = arith.constant 0 : index
      %c0_5 = arith.constant 0 : index
      %c0_6 = arith.constant 0 : index
      %12 = vector.load %arg3[%c0, %c0_5, %c0_6] : memref<1x8x8xbf16, #tpu.memory_space<vmem>>, vector<1x8x8xbf16>
      %13 = vector.shape_cast %12 : vector<1x8x8xbf16> to vector<8x8xbf16>
      %c0_7 = arith.constant 0 : index
      %c0_8 = arith.constant 0 : index
      %c0_9 = arith.constant 0 : index
      %14 = vector.load %arg4[%c0_7, %c0_8, %c0_9] : memref<1x8x8xbf16, #tpu.memory_space<vmem>>, vector<1x8x8xbf16>
      %15 = vector.shape_cast %14 : vector<1x8x8xbf16> to vector<8x8xbf16>
      %cst = arith.constant dense<0.000000e+00> : vector<8x8xf32>
      %16 = tpu.matmul %13, %15, %cst {dimension_numbers = #tpu.dot_dimension_numbers<[1], [1], [0], [0], [0, 0, 1, 0], [], []>} : vector<8x8xbf16>, vector<8x8xbf16>, vector<8x8xf32> -> vector<8x8xf32>
      %cst_10 = arith.constant 0.353553385 : f32
      %17 = vector.broadcast %cst_10 : f32 to vector<8x8xf32>
      %18 = arith.mulf %16, %17 : vector<8x8xf32>
      %19 = tpu.iota {dimensions = array<i32: 0>} : vector<8x8xi32>
      %20 = tpu.iota {dimensions = array<i32: 1>} : vector<8x8xi32>
      %21 = arith.subi %19, %20 : vector<8x8xi32>
      %c8_i32_11 = arith.constant 8 : i32
      %22 = arith.muli %arg2, %c8_i32_11 : i32
      %c8_i32_12 = arith.constant 8 : i32
      %23 = arith.muli %arg1, %c8_i32_12 : i32
      %24 = arith.subi %22, %23 : i32
      %25 = vector.broadcast %24 : i32 to vector<8x8xi32>
      %26 = arith.cmpi sge, %21, %25 : vector<8x8xi32>
      %cst_13 = arith.constant -1.000000e+30 : f32
      %27 = vector.broadcast %cst_13 : f32 to vector<8x8xf32>
      %28 = arith.select %26, %18, %27 : vector<8x8xi1>, vector<8x8xf32>
      %c0_14 = arith.constant 0 : index
      %c0_15 = arith.constant 0 : index
      %29 = vector.load %arg7[%c0_14, %c0_15] : memref<8x1xf32, #tpu.memory_space<vmem>>, vector<8x1xf32>
      %cst_16 = arith.constant dense<0xFF800000> : vector<8xf32>
      %30 = vector.multi_reduction <maximumf>, %28, %cst_16 [1] : vector<8x8xf32> to vector<8xf32>
      %31 = vector.shape_cast %30 : vector<8xf32> to vector<8x1xf32>
      %32 = arith.maximumf %29, %31 : vector<8x1xf32>
      %33 = arith.subf %29, %32 : vector<8x1xf32>
      %34 = math.exp %33 : vector<8x1xf32>
      %35 = vector.broadcast %32 : vector<8x1xf32> to vector<8x8xf32>
      %36 = arith.subf %28, %35 : vector<8x8xf32>
      %37 = math.exp %36 : vector<8x8xf32>
      %c0_17 = arith.constant 0 : index
      %c0_18 = arith.constant 0 : index
      %38 = vector.load %arg8[%c0_17, %c0_18] : memref<8x1xf32, #tpu.memory_space<vmem>>, vector<8x1xf32>
      %39 = arith.mulf %34, %38 : vector<8x1xf32>
      %cst_19 = arith.constant dense<0.000000e+00> : vector<8xf32>
      %40 = vector.multi_reduction <add>, %37, %cst_19 [1] : vector<8x8xf32> to vector<8xf32>
      %41 = vector.shape_cast %40 : vector<8xf32> to vector<8x1xf32>
      %42 = arith.addf %39, %41 : vector<8x1xf32>
      %c0_20 = arith.constant 0 : index
      %c0_21 = arith.constant 0 : index
      %43 = vector.load %arg8[%c0_20, %c0_21] : memref<8x1xf32, #tpu.memory_space<vmem>>, vector<8x1xf32>
      tpu.vector_store %arg8[%c0_20, %c0_21], %42 {strides = array<i32>} : memref<8x1xf32, #tpu.memory_space<vmem>>, vector<8x1xf32>,
      %c0_22 = arith.constant 0 : index
      %c0_23 = arith.constant 0 : index
      %44 = vector.load %arg9[%c0_22, %c0_23] : memref<8x8xf32, #tpu.memory_space<vmem>>, vector<8x8xf32>
      %45 = vector.broadcast %34 : vector<8x1xf32> to vector<8x8xf32>
      %46 = arith.mulf %45, %44 : vector<8x8xf32>
      %47 = arith.truncf %37 : vector<8x8xf32> to vector<8x8xbf16>
      %c0_24 = arith.constant 0 : index
      %c0_25 = arith.constant 0 : index
      %c0_26 = arith.constant 0 : index
      %48 = vector.load %arg5[%c0_24, %c0_25, %c0_26] : memref<1x8x8xbf16, #tpu.memory_space<vmem>>, vector<1x8x8xbf16>
      %49 = vector.shape_cast %48 : vector<1x8x8xbf16> to vector<8x8xbf16>
      %cst_27 = arith.constant dense<0.000000e+00> : vector<8x8xf32>
      %50 = tpu.matmul %47, %49, %cst_27 {dimension_numbers = #tpu.dot_dimension_numbers<[1], [0], [0], [1], [0, 0, 1, 1], [], []>} : vector<8x8xbf16>, vector<8x8xbf16>, vector<8x8xf32> -> vector<8x8xf32>
      %51 = arith.addf %46, %50 : vector<8x8xf32>
      %c0_28 = arith.constant 0 : index
      %c0_29 = arith.constant 0 : index
      %52 = vector.load %arg9[%c0_28, %c0_29] : memref<8x8xf32, #tpu.memory_space<vmem>>, vector<8x8xf32>
      tpu.vector_store %arg9[%c0_28, %c0_29], %51 {strides = array<i32>} : memref<8x8xf32, #tpu.memory_space<vmem>>, vector<8x8xf32>,
      %c0_30 = arith.constant 0 : index
      %c0_31 = arith.constant 0 : index
      %53 = vector.load %arg7[%c0_30, %c0_31] : memref<8x1xf32, #tpu.memory_space<vmem>>, vector<8x1xf32>
      tpu.vector_store %arg7[%c0_30, %c0_31], %32 {strides = array<i32>} : memref<8x1xf32, #tpu.memory_space<vmem>>, vector<8x1xf32>,
    } else {
    }
    %c0_i32_3 = arith.constant 0 : i32
    %9 = arith.cmpi eq, %arg2, %c0_i32_3 : i32
    %10 = arith.extui %9 : i1 to i32
    %c0_i32_4 = arith.constant 0 : i32
    %11 = arith.cmpi ne, %10, %c0_i32_4 : i32
    scf.if %11 {
      %c0 = arith.constant 0 : index
      %c0_5 = arith.constant 0 : index
      %12 = vector.load %arg8[%c0, %c0_5] : memref<8x1xf32, #tpu.memory_space<vmem>>, vector<8x1xf32>
      %13 = tpu.reciprocal %12 {approx = true} : vector<8x1xf32> -> vector<8x1xf32>
      %c0_6 = arith.constant 0 : index
      %c0_7 = arith.constant 0 : index
      %14 = vector.load %arg9[%c0_6, %c0_7] : memref<8x8xf32, #tpu.memory_space<vmem>>, vector<8x8xf32>
      %15 = vector.broadcast %13 : vector<8x1xf32> to vector<8x8xf32>
      %16 = arith.mulf %14, %15 : vector<8x8xf32>
      %17 = arith.truncf %16 : vector<8x8xf32> to vector<8x8xbf16>
      %c0_8 = arith.constant 0 : index
      %c0_9 = arith.constant 0 : index
      %c0_10 = arith.constant 0 : index
      %18 = vector.load %arg6[%c0_8, %c0_9, %c0_10] : memref<1x8x8xbf16, #tpu.memory_space<vmem>>, vector<1x8x8xbf16>
      %19 = vector.shape_cast %18 : vector<1x8x8xbf16> to vector<8x8xbf16>
      %20 = vector.shape_cast %17 : vector<8x8xbf16> to vector<1x8x8xbf16>
      tpu.vector_store %arg6[%c0_8, %c0_9, %c0_10], %20 {strides = array<i32>} : memref<1x8x8xbf16, #tpu.memory_space<vmem>>, vector<1x8x8xbf16>,
    } else {
    }
    return
  }
  func.func @transform_0(%arg0: i32, %arg1: i32, %arg2: i32) -> (i32, i32, i32) {
    %c0_i32 = arith.constant 0 : i32
    %c0_i32_0 = arith.constant 0 : i32
    return %arg0, %arg1, %c0_i32 : i32, i32, i32
  }
  func.func @transform_1(%arg0: i32, %arg1: i32, %arg2: i32) -> (i32, i32, i32) {
    %c0_i32 = arith.constant 0 : i32
    %c0_i32_0 = arith.constant 0 : i32
    return %arg0, %arg2, %c0_i32 : i32, i32, i32
  }
  func.func @transform_2(%arg0: i32, %arg1: i32, %arg2: i32) -> (i32, i32, i32) {
    %c0_i32 = arith.constant 0 : i32
    %c0_i32_0 = arith.constant 0 : i32
    return %arg0, %arg2, %c0_i32 : i32, i32, i32
  }
  func.func @transform_3(%arg0: i32, %arg1: i32, %arg2: i32) -> (i32, i32, i32) {
    %c0_i32 = arith.constant 0 : i32
    %c0_i32_0 = arith.constant 0 : i32
    return %arg0, %arg1, %c0_i32 : i32, i32, i32
  }
}

module attributes {stable_mosaic.version = 11 : i64} {
  func.func @_ln_matmul_cached_kernel(%arg0: i32, %arg1: i32, %arg2: memref<16x32xf32, #tpu.memory_space<vmem>>, %arg3: memref<32x96xbf16, #tpu.memory_space<vmem>>, %arg4: memref<1x32xf32, #tpu.memory_space<vmem>>, %arg5: memref<1x32xf32, #tpu.memory_space<vmem>>, %arg6: memref<1x96xf32, #tpu.memory_space<vmem>>, %arg7: memref<16x96xbf16, #tpu.memory_space<vmem>>, %arg8: memref<16x32xbf16, #tpu.memory_space<vmem>>) attributes {dimension_semantics = [#tpu.dimension_semantics<parallel>, #tpu.dimension_semantics<arbitrary>], iteration_bounds = array<i64: 1, 1>, scalar_prefetch = 0 : i64, scratch_operands = 1 : i64, tpu.core_type = #tpu.core_type<tc>, window_params = [{transform_indices = @transform_0, window_bounds = array<i64: 16, 32>}, {transform_indices = @transform_1, window_bounds = array<i64: 32, 96>}, {pipeline_mode = #tpu.pipeline_mode<synchronous>, transform_indices = @transform_2, window_bounds = array<i64: 1, 32>}, {pipeline_mode = #tpu.pipeline_mode<synchronous>, transform_indices = @transform_3, window_bounds = array<i64: 1, 32>}, {transform_indices = @transform_4, window_bounds = array<i64: 1, 96>}, {transform_indices = @transform_5, window_bounds = array<i64: 16, 96>}]} {
    %c0_i32 = arith.constant 0 : i32
    %0 = arith.cmpi eq, %arg1, %c0_i32 : i32
    %1 = arith.extui %0 : i1 to i32
    %c0_i32_0 = arith.constant 0 : i32
    %2 = arith.cmpi ne, %1, %c0_i32_0 : i32
    scf.if %2 {
      %c0_8 = arith.constant 0 : index
      %c0_9 = arith.constant 0 : index
      %11 = vector.load %arg2[%c0_8, %c0_9] : memref<16x32xf32, #tpu.memory_space<vmem>>, vector<16x32xf32>
      %cst_10 = arith.constant dense<0.000000e+00> : vector<16xf32>
      %12 = vector.multi_reduction <add>, %11, %cst_10 [1] : vector<16x32xf32> to vector<16xf32>
      %13 = vector.shape_cast %12 : vector<16xf32> to vector<16x1xf32>
      %cst_11 = arith.constant 3.200000e+01 : f32
      %14 = vector.broadcast %cst_11 : f32 to vector<16x1xf32>
      %15 = arith.divf %13, %14 : vector<16x1xf32>
      %16 = vector.broadcast %15 : vector<16x1xf32> to vector<16x32xf32>
      %17 = arith.subf %11, %16 : vector<16x32xf32>
      %18 = arith.mulf %17, %17 : vector<16x32xf32>
      %cst_12 = arith.constant dense<0.000000e+00> : vector<16xf32>
      %19 = vector.multi_reduction <add>, %18, %cst_12 [1] : vector<16x32xf32> to vector<16xf32>
      %20 = vector.shape_cast %19 : vector<16xf32> to vector<16x1xf32>
      %cst_13 = arith.constant 3.200000e+01 : f32
      %21 = vector.broadcast %cst_13 : f32 to vector<16x1xf32>
      %22 = arith.divf %20, %21 : vector<16x1xf32>
      %cst_14 = arith.constant 9.99999974E-6 : f32
      %23 = vector.broadcast %cst_14 : f32 to vector<16x1xf32>
      %24 = arith.addf %22, %23 : vector<16x1xf32>
      %25 = math.rsqrt %24 : vector<16x1xf32>
      %26 = vector.broadcast %25 : vector<16x1xf32> to vector<16x32xf32>
      %27 = arith.mulf %17, %26 : vector<16x32xf32>
      %c0_15 = arith.constant 0 : index
      %c0_16 = arith.constant 0 : index
      %28 = vector.load %arg4[%c0_15, %c0_16] : memref<1x32xf32, #tpu.memory_space<vmem>>, vector<1x32xf32>
      %29 = vector.broadcast %28 : vector<1x32xf32> to vector<16x32xf32>
      %30 = arith.mulf %27, %29 : vector<16x32xf32>
      %c0_17 = arith.constant 0 : index
      %c0_18 = arith.constant 0 : index
      %31 = vector.load %arg5[%c0_17, %c0_18] : memref<1x32xf32, #tpu.memory_space<vmem>>, vector<1x32xf32>
      %32 = vector.broadcast %31 : vector<1x32xf32> to vector<16x32xf32>
      %33 = arith.addf %30, %32 : vector<16x32xf32>
      %34 = arith.truncf %33 : vector<16x32xf32> to vector<16x32xbf16>
      %c0_19 = arith.constant 0 : index
      %c0_20 = arith.constant 0 : index
      %35 = vector.load %arg8[%c0_19, %c0_20] : memref<16x32xbf16, #tpu.memory_space<vmem>>, vector<16x32xbf16>
      tpu.vector_store %arg8[%c0_19, %c0_20], %34 {strides = array<i32>} : memref<16x32xbf16, #tpu.memory_space<vmem>>, vector<16x32xbf16>,
    } else {
    }
    %c0 = arith.constant 0 : index
    %c0_1 = arith.constant 0 : index
    %3 = vector.load %arg8[%c0, %c0_1] : memref<16x32xbf16, #tpu.memory_space<vmem>>, vector<16x32xbf16>
    %c0_2 = arith.constant 0 : index
    %c0_3 = arith.constant 0 : index
    %4 = vector.load %arg3[%c0_2, %c0_3] : memref<32x96xbf16, #tpu.memory_space<vmem>>, vector<32x96xbf16>
    %cst = arith.constant dense<0.000000e+00> : vector<16x96xf32>
    %5 = tpu.matmul %3, %4, %cst {dimension_numbers = #tpu.dot_dimension_numbers<[1], [0], [0], [1], [0, 0, 1, 1], [], []>} : vector<16x32xbf16>, vector<32x96xbf16>, vector<16x96xf32> -> vector<16x96xf32>
    %c0_4 = arith.constant 0 : index
    %c0_5 = arith.constant 0 : index
    %6 = vector.load %arg6[%c0_4, %c0_5] : memref<1x96xf32, #tpu.memory_space<vmem>>, vector<1x96xf32>
    %7 = vector.broadcast %6 : vector<1x96xf32> to vector<16x96xf32>
    %8 = arith.addf %5, %7 : vector<16x96xf32>
    %9 = arith.truncf %8 : vector<16x96xf32> to vector<16x96xbf16>
    %c0_6 = arith.constant 0 : index
    %c0_7 = arith.constant 0 : index
    %10 = vector.load %arg7[%c0_6, %c0_7] : memref<16x96xbf16, #tpu.memory_space<vmem>>, vector<16x96xbf16>
    tpu.vector_store %arg7[%c0_6, %c0_7], %9 {strides = array<i32>} : memref<16x96xbf16, #tpu.memory_space<vmem>>, vector<16x96xbf16>,
    return
  }
  func.func @transform_0(%arg0: i32, %arg1: i32) -> (i32, i32) {
    %c0_i32 = arith.constant 0 : i32
    %c0_i32_0 = arith.constant 0 : i32
    return %arg0, %c0_i32 : i32, i32
  }
  func.func @transform_1(%arg0: i32, %arg1: i32) -> (i32, i32) {
    %c0_i32 = arith.constant 0 : i32
    %c0_i32_0 = arith.constant 0 : i32
    return %c0_i32, %arg1 : i32, i32
  }
  func.func @transform_2(%arg0: i32, %arg1: i32) -> (i32, i32) {
    %c0_i32 = arith.constant 0 : i32
    %c0_i32_0 = arith.constant 0 : i32
    %c0_i32_1 = arith.constant 0 : i32
    return %c0_i32, %c0_i32_0 : i32, i32
  }
  func.func @transform_3(%arg0: i32, %arg1: i32) -> (i32, i32) {
    %c0_i32 = arith.constant 0 : i32
    %c0_i32_0 = arith.constant 0 : i32
    %c0_i32_1 = arith.constant 0 : i32
    return %c0_i32, %c0_i32_0 : i32, i32
  }
  func.func @transform_4(%arg0: i32, %arg1: i32) -> (i32, i32) {
    %c0_i32 = arith.constant 0 : i32
    %c0_i32_0 = arith.constant 0 : i32
    return %c0_i32, %arg1 : i32, i32
  }
  func.func @transform_5(%arg0: i32, %arg1: i32) -> (i32, i32) {
    %c0_i32 = arith.constant 0 : i32
    return %arg0, %arg1 : i32, i32
  }
}

module attributes {stable_mosaic.version = 11 : i64} {
  func.func @_matmul_bias_residual_kernel(%arg0: i32, %arg1: i32, %arg2: i32, %arg3: memref<16x32xbf16, #tpu.memory_space<vmem>>, %arg4: memref<32x32xbf16, #tpu.memory_space<vmem>>, %arg5: memref<1x32xf32, #tpu.memory_space<vmem>>, %arg6: memref<16x32xf32, #tpu.memory_space<vmem>>, %arg7: memref<16x32xf32, #tpu.memory_space<vmem>>, %arg8: memref<16x32xf32, #tpu.memory_space<vmem>>) attributes {dimension_semantics = [#tpu.dimension_semantics<parallel>, #tpu.dimension_semantics<parallel>, #tpu.dimension_semantics<arbitrary>], iteration_bounds = array<i64: 1, 1, 1>, scalar_prefetch = 0 : i64, scratch_operands = 1 : i64, tpu.core_type = #tpu.core_type<tc>, window_params = [{transform_indices = @transform_0, window_bounds = array<i64: 16, 32>}, {transform_indices = @transform_1, window_bounds = array<i64: 32, 32>}, {transform_indices = @transform_2, window_bounds = array<i64: 1, 32>}, {transform_indices = @transform_3, window_bounds = array<i64: 16, 32>}, {transform_indices = @transform_4, window_bounds = array<i64: 16, 32>}]} {
    %c0_i32 = arith.constant 0 : i32
    %0 = arith.cmpi eq, %arg2, %c0_i32 : i32
    %1 = arith.extui %0 : i1 to i32
    %c0_i32_0 = arith.constant 0 : i32
    %2 = arith.cmpi ne, %1, %c0_i32_0 : i32
    scf.if %2 {
      %cst_10 = arith.constant 0.000000e+00 : f32
      %12 = vector.broadcast %cst_10 : f32 to vector<16x32xf32>
      %c0_11 = arith.constant 0 : index
      %c0_12 = arith.constant 0 : index
      %13 = vector.load %arg8[%c0_11, %c0_12] : memref<16x32xf32, #tpu.memory_space<vmem>>, vector<16x32xf32>
      tpu.vector_store %arg8[%c0_11, %c0_12], %12 {strides = array<i32>} : memref<16x32xf32, #tpu.memory_space<vmem>>, vector<16x32xf32>,
    } else {
    }
    %c0 = arith.constant 0 : index
    %c0_1 = arith.constant 0 : index
    %3 = vector.load %arg8[%c0, %c0_1] : memref<16x32xf32, #tpu.memory_space<vmem>>, vector<16x32xf32>
    %c0_2 = arith.constant 0 : index
    %c0_3 = arith.constant 0 : index
    %4 = vector.load %arg3[%c0_2, %c0_3] : memref<16x32xbf16, #tpu.memory_space<vmem>>, vector<16x32xbf16>
    %c0_4 = arith.constant 0 : index
    %c0_5 = arith.constant 0 : index
    %5 = vector.load %arg4[%c0_4, %c0_5] : memref<32x32xbf16, #tpu.memory_space<vmem>>, vector<32x32xbf16>
    %cst = arith.constant dense<0.000000e+00> : vector<16x32xf32>
    %6 = tpu.matmul %4, %5, %cst {dimension_numbers = #tpu.dot_dimension_numbers<[1], [0], [0], [1], [0, 0, 1, 1], [], []>} : vector<16x32xbf16>, vector<32x32xbf16>, vector<16x32xf32> -> vector<16x32xf32>
    %7 = arith.addf %3, %6 : vector<16x32xf32>
    %c0_6 = arith.constant 0 : index
    %c0_7 = arith.constant 0 : index
    %8 = vector.load %arg8[%c0_6, %c0_7] : memref<16x32xf32, #tpu.memory_space<vmem>>, vector<16x32xf32>
    tpu.vector_store %arg8[%c0_6, %c0_7], %7 {strides = array<i32>} : memref<16x32xf32, #tpu.memory_space<vmem>>, vector<16x32xf32>,
    %c0_i32_8 = arith.constant 0 : i32
    %9 = arith.cmpi eq, %arg2, %c0_i32_8 : i32
    %10 = arith.extui %9 : i1 to i32
    %c0_i32_9 = arith.constant 0 : i32
    %11 = arith.cmpi ne, %10, %c0_i32_9 : i32
    scf.if %11 {
      %c0_10 = arith.constant 0 : index
      %c0_11 = arith.constant 0 : index
      %12 = vector.load %arg8[%c0_10, %c0_11] : memref<16x32xf32, #tpu.memory_space<vmem>>, vector<16x32xf32>
      %c0_12 = arith.constant 0 : index
      %c0_13 = arith.constant 0 : index
      %13 = vector.load %arg5[%c0_12, %c0_13] : memref<1x32xf32, #tpu.memory_space<vmem>>, vector<1x32xf32>
      %14 = vector.broadcast %13 : vector<1x32xf32> to vector<16x32xf32>
      %15 = arith.addf %12, %14 : vector<16x32xf32>
      %c0_14 = arith.constant 0 : index
      %c0_15 = arith.constant 0 : index
      %16 = vector.load %arg6[%c0_14, %c0_15] : memref<16x32xf32, #tpu.memory_space<vmem>>, vector<16x32xf32>
      %17 = arith.addf %15, %16 : vector<16x32xf32>
      %c0_16 = arith.constant 0 : index
      %c0_17 = arith.constant 0 : index
      %18 = vector.load %arg7[%c0_16, %c0_17] : memref<16x32xf32, #tpu.memory_space<vmem>>, vector<16x32xf32>
      tpu.vector_store %arg7[%c0_16, %c0_17], %17 {strides = array<i32>} : memref<16x32xf32, #tpu.memory_space<vmem>>, vector<16x32xf32>,
    } else {
    }
    return
  }
  func.func @transform_0(%arg0: i32, %arg1: i32, %arg2: i32) -> (i32, i32) {
    %c0_i32 = arith.constant 0 : i32
    return %arg0, %arg2 : i32, i32
  }
  func.func @transform_1(%arg0: i32, %arg1: i32, %arg2: i32) -> (i32, i32) {
    %c0_i32 = arith.constant 0 : i32
    return %arg2, %arg1 : i32, i32
  }
  func.func @transform_2(%arg0: i32, %arg1: i32, %arg2: i32) -> (i32, i32) {
    %c0_i32 = arith.constant 0 : i32
    %c0_i32_0 = arith.constant 0 : i32
    return %c0_i32, %arg1 : i32, i32
  }
  func.func @transform_3(%arg0: i32, %arg1: i32, %arg2: i32) -> (i32, i32) {
    %c0_i32 = arith.constant 0 : i32
    return %arg0, %arg1 : i32, i32
  }
  func.func @transform_4(%arg0: i32, %arg1: i32, %arg2: i32) -> (i32, i32) {
    %c0_i32 = arith.constant 0 : i32
    return %arg0, %arg1 : i32, i32
  }
}

module attributes {stable_mosaic.version = 11 : i64} {
  func.func @_ln_matmul_cached_kernel(%arg0: i32, %arg1: i32, %arg2: memref<16x32xf32, #tpu.memory_space<vmem>>, %arg3: memref<32x128xbf16, #tpu.memory_space<vmem>>, %arg4: memref<1x32xf32, #tpu.memory_space<vmem>>, %arg5: memref<1x32xf32, #tpu.memory_space<vmem>>, %arg6: memref<1x128xf32, #tpu.memory_space<vmem>>, %arg7: memref<16x128xbf16, #tpu.memory_space<vmem>>, %arg8: memref<16x32xbf16, #tpu.memory_space<vmem>>) attributes {dimension_semantics = [#tpu.dimension_semantics<parallel>, #tpu.dimension_semantics<arbitrary>], iteration_bounds = array<i64: 1, 1>, scalar_prefetch = 0 : i64, scratch_operands = 1 : i64, tpu.core_type = #tpu.core_type<tc>, window_params = [{transform_indices = @transform_0, window_bounds = array<i64: 16, 32>}, {transform_indices = @transform_1, window_bounds = array<i64: 32, 128>}, {pipeline_mode = #tpu.pipeline_mode<synchronous>, transform_indices = @transform_2, window_bounds = array<i64: 1, 32>}, {pipeline_mode = #tpu.pipeline_mode<synchronous>, transform_indices = @transform_3, window_bounds = array<i64: 1, 32>}, {transform_indices = @transform_4, window_bounds = array<i64: 1, 128>}, {transform_indices = @transform_5, window_bounds = array<i64: 16, 128>}]} {
    %c0_i32 = arith.constant 0 : i32
    %0 = arith.cmpi eq, %arg1, %c0_i32 : i32
    %1 = arith.extui %0 : i1 to i32
    %c0_i32_0 = arith.constant 0 : i32
    %2 = arith.cmpi ne, %1, %c0_i32_0 : i32
    scf.if %2 {
      %c0_11 = arith.constant 0 : index
      %c0_12 = arith.constant 0 : index
      %19 = vector.load %arg2[%c0_11, %c0_12] : memref<16x32xf32, #tpu.memory_space<vmem>>, vector<16x32xf32>
      %cst_13 = arith.constant dense<0.000000e+00> : vector<16xf32>
      %20 = vector.multi_reduction <add>, %19, %cst_13 [1] : vector<16x32xf32> to vector<16xf32>
      %21 = vector.shape_cast %20 : vector<16xf32> to vector<16x1xf32>
      %cst_14 = arith.constant 3.200000e+01 : f32
      %22 = vector.broadcast %cst_14 : f32 to vector<16x1xf32>
      %23 = arith.divf %21, %22 : vector<16x1xf32>
      %24 = vector.broadcast %23 : vector<16x1xf32> to vector<16x32xf32>
      %25 = arith.subf %19, %24 : vector<16x32xf32>
      %26 = arith.mulf %25, %25 : vector<16x32xf32>
      %cst_15 = arith.constant dense<0.000000e+00> : vector<16xf32>
      %27 = vector.multi_reduction <add>, %26, %cst_15 [1] : vector<16x32xf32> to vector<16xf32>
      %28 = vector.shape_cast %27 : vector<16xf32> to vector<16x1xf32>
      %cst_16 = arith.constant 3.200000e+01 : f32
      %29 = vector.broadcast %cst_16 : f32 to vector<16x1xf32>
      %30 = arith.divf %28, %29 : vector<16x1xf32>
      %cst_17 = arith.constant 9.99999974E-6 : f32
      %31 = vector.broadcast %cst_17 : f32 to vector<16x1xf32>
      %32 = arith.addf %30, %31 : vector<16x1xf32>
      %33 = math.rsqrt %32 : vector<16x1xf32>
      %34 = vector.broadcast %33 : vector<16x1xf32> to vector<16x32xf32>
      %35 = arith.mulf %25, %34 : vector<16x32xf32>
      %c0_18 = arith.constant 0 : index
      %c0_19 = arith.constant 0 : index
      %36 = vector.load %arg4[%c0_18, %c0_19] : memref<1x32xf32, #tpu.memory_space<vmem>>, vector<1x32xf32>
      %37 = vector.broadcast %36 : vector<1x32xf32> to vector<16x32xf32>
      %38 = arith.mulf %35, %37 : vector<16x32xf32>
      %c0_20 = arith.constant 0 : index
      %c0_21 = arith.constant 0 : index
      %39 = vector.load %arg5[%c0_20, %c0_21] : memref<1x32xf32, #tpu.memory_space<vmem>>, vector<1x32xf32>
      %40 = vector.broadcast %39 : vector<1x32xf32> to vector<16x32xf32>
      %41 = arith.addf %38, %40 : vector<16x32xf32>
      %42 = arith.truncf %41 : vector<16x32xf32> to vector<16x32xbf16>
      %c0_22 = arith.constant 0 : index
      %c0_23 = arith.constant 0 : index
      %43 = vector.load %arg8[%c0_22, %c0_23] : memref<16x32xbf16, #tpu.memory_space<vmem>>, vector<16x32xbf16>
      tpu.vector_store %arg8[%c0_22, %c0_23], %42 {strides = array<i32>} : memref<16x32xbf16, #tpu.memory_space<vmem>>, vector<16x32xbf16>,
    } else {
    }
    %c0 = arith.constant 0 : index
    %c0_1 = arith.constant 0 : index
    %3 = vector.load %arg8[%c0, %c0_1] : memref<16x32xbf16, #tpu.memory_space<vmem>>, vector<16x32xbf16>
    %c0_2 = arith.constant 0 : index
    %c0_3 = arith.constant 0 : index
    %4 = vector.load %arg3[%c0_2, %c0_3] : memref<32x128xbf16, #tpu.memory_space<vmem>>, vector<32x128xbf16>
    %cst = arith.constant dense<0.000000e+00> : vector<16x128xf32>
    %5 = tpu.matmul %3, %4, %cst {dimension_numbers = #tpu.dot_dimension_numbers<[1], [0], [0], [1], [0, 0, 1, 1], [], []>} : vector<16x32xbf16>, vector<32x128xbf16>, vector<16x128xf32> -> vector<16x128xf32>
    %c0_4 = arith.constant 0 : index
    %c0_5 = arith.constant 0 : index
    %6 = vector.load %arg6[%c0_4, %c0_5] : memref<1x128xf32, #tpu.memory_space<vmem>>, vector<1x128xf32>
    %7 = vector.broadcast %6 : vector<1x128xf32> to vector<16x128xf32>
    %8 = arith.addf %5, %7 : vector<16x128xf32>
    %cst_6 = arith.constant 5.000000e-01 : f32
    %9 = vector.broadcast %cst_6 : f32 to vector<16x128xf32>
    %10 = arith.mulf %9, %8 : vector<16x128xf32>
    %cst_7 = arith.constant 0.707106769 : f32
    %11 = vector.broadcast %cst_7 : f32 to vector<16x128xf32>
    %12 = arith.mulf %8, %11 : vector<16x128xf32>
    %13 = math.erf %12 : vector<16x128xf32>
    %cst_8 = arith.constant 1.000000e+00 : f32
    %14 = vector.broadcast %cst_8 : f32 to vector<16x128xf32>
    %15 = arith.addf %14, %13 : vector<16x128xf32>
    %16 = arith.mulf %10, %15 : vector<16x128xf32>
    %17 = arith.truncf %16 : vector<16x128xf32> to vector<16x128xbf16>
    %c0_9 = arith.constant 0 : index
    %c0_10 = arith.constant 0 : index
    %18 = vector.load %arg7[%c0_9, %c0_10] : memref<16x128xbf16, #tpu.memory_space<vmem>>, vector<16x128xbf16>
    tpu.vector_store %arg7[%c0_9, %c0_10], %17 {strides = array<i32>} : memref<16x128xbf16, #tpu.memory_space<vmem>>, vector<16x128xbf16>,
    return
  }
  func.func @transform_0(%arg0: i32, %arg1: i32) -> (i32, i32) {
    %c0_i32 = arith.constant 0 : i32
    %c0_i32_0 = arith.constant 0 : i32
    return %arg0, %c0_i32 : i32, i32
  }
  func.func @transform_1(%arg0: i32, %arg1: i32) -> (i32, i32) {
    %c0_i32 = arith.constant 0 : i32
    %c0_i32_0 = arith.constant 0 : i32
    return %c0_i32, %arg1 : i32, i32
  }
  func.func @transform_2(%arg0: i32, %arg1: i32) -> (i32, i32) {
    %c0_i32 = arith.constant 0 : i32
    %c0_i32_0 = arith.constant 0 : i32
    %c0_i32_1 = arith.constant 0 : i32
    return %c0_i32, %c0_i32_0 : i32, i32
  }
  func.func @transform_3(%arg0: i32, %arg1: i32) -> (i32, i32) {
    %c0_i32 = arith.constant 0 : i32
    %c0_i32_0 = arith.constant 0 : i32
    %c0_i32_1 = arith.constant 0 : i32
    return %c0_i32, %c0_i32_0 : i32, i32
  }
  func.func @transform_4(%arg0: i32, %arg1: i32) -> (i32, i32) {
    %c0_i32 = arith.constant 0 : i32
    %c0_i32_0 = arith.constant 0 : i32
    return %c0_i32, %arg1 : i32, i32
  }
  func.func @transform_5(%arg0: i32, %arg1: i32) -> (i32, i32) {
    %c0_i32 = arith.constant 0 : i32
    return %arg0, %arg1 : i32, i32
  }
}

module attributes {stable_mosaic.version = 11 : i64} {
  func.func @_matmul_bias_residual_kernel(%arg0: i32, %arg1: i32, %arg2: i32, %arg3: memref<16x128xbf16, #tpu.memory_space<vmem>>, %arg4: memref<128x32xbf16, #tpu.memory_space<vmem>>, %arg5: memref<1x32xf32, #tpu.memory_space<vmem>>, %arg6: memref<16x32xf32, #tpu.memory_space<vmem>>, %arg7: memref<16x32xf32, #tpu.memory_space<vmem>>, %arg8: memref<16x32xf32, #tpu.memory_space<vmem>>) attributes {dimension_semantics = [#tpu.dimension_semantics<parallel>, #tpu.dimension_semantics<parallel>, #tpu.dimension_semantics<arbitrary>], iteration_bounds = array<i64: 1, 1, 1>, scalar_prefetch = 0 : i64, scratch_operands = 1 : i64, tpu.core_type = #tpu.core_type<tc>, window_params = [{transform_indices = @transform_0, window_bounds = array<i64: 16, 128>}, {transform_indices = @transform_1, window_bounds = array<i64: 128, 32>}, {transform_indices = @transform_2, window_bounds = array<i64: 1, 32>}, {transform_indices = @transform_3, window_bounds = array<i64: 16, 32>}, {transform_indices = @transform_4, window_bounds = array<i64: 16, 32>}]} {
    %c0_i32 = arith.constant 0 : i32
    %0 = arith.cmpi eq, %arg2, %c0_i32 : i32
    %1 = arith.extui %0 : i1 to i32
    %c0_i32_0 = arith.constant 0 : i32
    %2 = arith.cmpi ne, %1, %c0_i32_0 : i32
    scf.if %2 {
      %cst_10 = arith.constant 0.000000e+00 : f32
      %12 = vector.broadcast %cst_10 : f32 to vector<16x32xf32>
      %c0_11 = arith.constant 0 : index
      %c0_12 = arith.constant 0 : index
      %13 = vector.load %arg8[%c0_11, %c0_12] : memref<16x32xf32, #tpu.memory_space<vmem>>, vector<16x32xf32>
      tpu.vector_store %arg8[%c0_11, %c0_12], %12 {strides = array<i32>} : memref<16x32xf32, #tpu.memory_space<vmem>>, vector<16x32xf32>,
    } else {
    }
    %c0 = arith.constant 0 : index
    %c0_1 = arith.constant 0 : index
    %3 = vector.load %arg8[%c0, %c0_1] : memref<16x32xf32, #tpu.memory_space<vmem>>, vector<16x32xf32>
    %c0_2 = arith.constant 0 : index
    %c0_3 = arith.constant 0 : index
    %4 = vector.load %arg3[%c0_2, %c0_3] : memref<16x128xbf16, #tpu.memory_space<vmem>>, vector<16x128xbf16>
    %c0_4 = arith.constant 0 : index
    %c0_5 = arith.constant 0 : index
    %5 = vector.load %arg4[%c0_4, %c0_5] : memref<128x32xbf16, #tpu.memory_space<vmem>>, vector<128x32xbf16>
    %cst = arith.constant dense<0.000000e+00> : vector<16x32xf32>
    %6 = tpu.matmul %4, %5, %cst {dimension_numbers = #tpu.dot_dimension_numbers<[1], [0], [0], [1], [0, 0, 1, 1], [], []>} : vector<16x128xbf16>, vector<128x32xbf16>, vector<16x32xf32> -> vector<16x32xf32>
    %7 = arith.addf %3, %6 : vector<16x32xf32>
    %c0_6 = arith.constant 0 : index
    %c0_7 = arith.constant 0 : index
    %8 = vector.load %arg8[%c0_6, %c0_7] : memref<16x32xf32, #tpu.memory_space<vmem>>, vector<16x32xf32>
    tpu.vector_store %arg8[%c0_6, %c0_7], %7 {strides = array<i32>} : memref<16x32xf32, #tpu.memory_space<vmem>>, vector<16x32xf32>,
    %c0_i32_8 = arith.constant 0 : i32
    %9 = arith.cmpi eq, %arg2, %c0_i32_8 : i32
    %10 = arith.extui %9 : i1 to i32
    %c0_i32_9 = arith.constant 0 : i32
    %11 = arith.cmpi ne, %10, %c0_i32_9 : i32
    scf.if %11 {
      %c0_10 = arith.constant 0 : index
      %c0_11 = arith.constant 0 : index
      %12 = vector.load %arg8[%c0_10, %c0_11] : memref<16x32xf32, #tpu.memory_space<vmem>>, vector<16x32xf32>
      %c0_12 = arith.constant 0 : index
      %c0_13 = arith.constant 0 : index
      %13 = vector.load %arg5[%c0_12, %c0_13] : memref<1x32xf32, #tpu.memory_space<vmem>>, vector<1x32xf32>
      %14 = vector.broadcast %13 : vector<1x32xf32> to vector<16x32xf32>
      %15 = arith.addf %12, %14 : vector<16x32xf32>
      %c0_14 = arith.constant 0 : index
      %c0_15 = arith.constant 0 : index
      %16 = vector.load %arg6[%c0_14, %c0_15] : memref<16x32xf32, #tpu.memory_space<vmem>>, vector<16x32xf32>
      %17 = arith.addf %15, %16 : vector<16x32xf32>
      %c0_16 = arith.constant 0 : index
      %c0_17 = arith.constant 0 : index
      %18 = vector.load %arg7[%c0_16, %c0_17] : memref<16x32xf32, #tpu.memory_space<vmem>>, vector<16x32xf32>
      tpu.vector_store %arg7[%c0_16, %c0_17], %17 {strides = array<i32>} : memref<16x32xf32, #tpu.memory_space<vmem>>, vector<16x32xf32>,
    } else {
    }
    return
  }
  func.func @transform_0(%arg0: i32, %arg1: i32, %arg2: i32) -> (i32, i32) {
    %c0_i32 = arith.constant 0 : i32
    return %arg0, %arg2 : i32, i32
  }
  func.func @transform_1(%arg0: i32, %arg1: i32, %arg2: i32) -> (i32, i32) {
    %c0_i32 = arith.constant 0 : i32
    return %arg2, %arg1 : i32, i32
  }
  func.func @transform_2(%arg0: i32, %arg1: i32, %arg2: i32) -> (i32, i32) {
    %c0_i32 = arith.constant 0 : i32
    %c0_i32_0 = arith.constant 0 : i32
    return %c0_i32, %arg1 : i32, i32
  }
  func.func @transform_3(%arg0: i32, %arg1: i32, %arg2: i32) -> (i32, i32) {
    %c0_i32 = arith.constant 0 : i32
    return %arg0, %arg1 : i32, i32
  }
  func.func @transform_4(%arg0: i32, %arg1: i32, %arg2: i32) -> (i32, i32) {
    %c0_i32 = arith.constant 0 : i32
    return %arg0, %arg1 : i32, i32
  }
}

module attributes {stable_mosaic.version = 11 : i64} {
  func.func @_ln_matmul_kernel(%arg0: i32, %arg1: i32, %arg2: memref<2x32xf32, #tpu.memory_space<vmem>>, %arg3: memref<32x64xbf16, #tpu.memory_space<vmem>>, %arg4: memref<1x32xf32, #tpu.memory_space<vmem>>, %arg5: memref<1x32xf32, #tpu.memory_space<vmem>>, %arg6: memref<1x64xf32, #tpu.memory_space<vmem>>, %arg7: memref<2x64xf32, #tpu.memory_space<vmem>>) attributes {dimension_semantics = [#tpu.dimension_semantics<parallel>, #tpu.dimension_semantics<parallel>], iteration_bounds = array<i64: 1, 1>, scalar_prefetch = 0 : i64, scratch_operands = 0 : i64, tpu.core_type = #tpu.core_type<tc>, window_params = [{transform_indices = @transform_0, window_bounds = array<i64: 2, 32>}, {transform_indices = @transform_1, window_bounds = array<i64: 32, 64>}, {pipeline_mode = #tpu.pipeline_mode<synchronous>, transform_indices = @transform_2, window_bounds = array<i64: 1, 32>}, {pipeline_mode = #tpu.pipeline_mode<synchronous>, transform_indices = @transform_3, window_bounds = array<i64: 1, 32>}, {transform_indices = @transform_4, window_bounds = array<i64: 1, 64>}, {transform_indices = @transform_5, window_bounds = array<i64: 2, 64>}]} {
    %c0 = arith.constant 0 : index
    %c0_0 = arith.constant 0 : index
    %0 = vector.load %arg2[%c0, %c0_0] : memref<2x32xf32, #tpu.memory_space<vmem>>, vector<2x32xf32>
    %cst = arith.constant dense<0.000000e+00> : vector<2xf32>
    %1 = vector.multi_reduction <add>, %0, %cst [1] : vector<2x32xf32> to vector<2xf32>
    %2 = vector.shape_cast %1 : vector<2xf32> to vector<2x1xf32>
    %cst_1 = arith.constant 3.200000e+01 : f32
    %3 = vector.broadcast %cst_1 : f32 to vector<2x1xf32>
    %4 = arith.divf %2, %3 : vector<2x1xf32>
    %5 = vector.broadcast %4 : vector<2x1xf32> to vector<2x32xf32>
    %6 = arith.subf %0, %5 : vector<2x32xf32>
    %7 = arith.mulf %6, %6 : vector<2x32xf32>
    %cst_2 = arith.constant dense<0.000000e+00> : vector<2xf32>
    %8 = vector.multi_reduction <add>, %7, %cst_2 [1] : vector<2x32xf32> to vector<2xf32>
    %9 = vector.shape_cast %8 : vector<2xf32> to vector<2x1xf32>
    %cst_3 = arith.constant 3.200000e+01 : f32
    %10 = vector.broadcast %cst_3 : f32 to vector<2x1xf32>
    %11 = arith.divf %9, %10 : vector<2x1xf32>
    %cst_4 = arith.constant 9.99999974E-6 : f32
    %12 = vector.broadcast %cst_4 : f32 to vector<2x1xf32>
    %13 = arith.addf %11, %12 : vector<2x1xf32>
    %14 = math.rsqrt %13 : vector<2x1xf32>
    %15 = vector.broadcast %14 : vector<2x1xf32> to vector<2x32xf32>
    %16 = arith.mulf %6, %15 : vector<2x32xf32>
    %c0_5 = arith.constant 0 : index
    %c0_6 = arith.constant 0 : index
    %17 = vector.load %arg4[%c0_5, %c0_6] : memref<1x32xf32, #tpu.memory_space<vmem>>, vector<1x32xf32>
    %18 = vector.broadcast %17 : vector<1x32xf32> to vector<2x32xf32>
    %19 = arith.mulf %16, %18 : vector<2x32xf32>
    %c0_7 = arith.constant 0 : index
    %c0_8 = arith.constant 0 : index
    %20 = vector.load %arg5[%c0_7, %c0_8] : memref<1x32xf32, #tpu.memory_space<vmem>>, vector<1x32xf32>
    %21 = vector.broadcast %20 : vector<1x32xf32> to vector<2x32xf32>
    %22 = arith.addf %19, %21 : vector<2x32xf32>
    %23 = arith.truncf %22 : vector<2x32xf32> to vector<2x32xbf16>
    %c0_9 = arith.constant 0 : index
    %c0_10 = arith.constant 0 : index
    %24 = vector.load %arg3[%c0_9, %c0_10] : memref<32x64xbf16, #tpu.memory_space<vmem>>, vector<32x64xbf16>
    %cst_11 = arith.constant dense<0.000000e+00> : vector<2x64xf32>
    %25 = tpu.matmul %23, %24, %cst_11 {dimension_numbers = #tpu.dot_dimension_numbers<[1], [0], [0], [1], [0, 0, 1, 1], [], []>} : vector<2x32xbf16>, vector<32x64xbf16>, vector<2x64xf32> -> vector<2x64xf32>
    %c0_12 = arith.constant 0 : index
    %c0_13 = arith.constant 0 : index
    %26 = vector.load %arg6[%c0_12, %c0_13] : memref<1x64xf32, #tpu.memory_space<vmem>>, vector<1x64xf32>
    %27 = vector.broadcast %26 : vector<1x64xf32> to vector<2x64xf32>
    %28 = arith.addf %25, %27 : vector<2x64xf32>
    %c0_14 = arith.constant 0 : index
    %c0_15 = arith.constant 0 : index
    %29 = vector.load %arg7[%c0_14, %c0_15] : memref<2x64xf32, #tpu.memory_space<vmem>>, vector<2x64xf32>
    tpu.vector_store %arg7[%c0_14, %c0_15], %28 {strides = array<i32>} : memref<2x64xf32, #tpu.memory_space<vmem>>, vector<2x64xf32>,
    return
  }
  func.func @transform_0(%arg0: i32, %arg1: i32) -> (i32, i32) {
    %c0_i32 = arith.constant 0 : i32
    %c0_i32_0 = arith.constant 0 : i32
    return %arg0, %c0_i32 : i32, i32
  }
  func.func @transform_1(%arg0: i32, %arg1: i32) -> (i32, i32) {
    %c0_i32 = arith.constant 0 : i32
    %c0_i32_0 = arith.constant 0 : i32
    return %c0_i32, %arg1 : i32, i32
  }
  func.func @transform_2(%arg0: i32, %arg1: i32) -> (i32, i32) {
    %c0_i32 = arith.constant 0 : i32
    %c0_i32_0 = arith.constant 0 : i32
    %c0_i32_1 = arith.constant 0 : i32
    return %c0_i32, %c0_i32_0 : i32, i32
  }
  func.func @transform_3(%arg0: i32, %arg1: i32) -> (i32, i32) {
    %c0_i32 = arith.constant 0 : i32
    %c0_i32_0 = arith.constant 0 : i32
    %c0_i32_1 = arith.constant 0 : i32
    return %c0_i32, %c0_i32_0 : i32, i32
  }
  func.func @transform_4(%arg0: i32, %arg1: i32) -> (i32, i32) {
    %c0_i32 = arith.constant 0 : i32
    %c0_i32_0 = arith.constant 0 : i32
    return %c0_i32, %arg1 : i32, i32
  }
  func.func @transform_5(%arg0: i32, %arg1: i32) -> (i32, i32) {
    %c0_i32 = arith.constant 0 : i32
    return %arg0, %arg1 : i32, i32
  }
}

</mosaic_0001>

<bundles_post_ra>
// kernel: _gpt_forward_impl.12
= control target key start
LH: loop header
LB: loop body
LE: loop exit
PB: predicated region body
PF: predicated region fallthrough
CT: control target
= control target key end

     0   :  { %s654_s12 = smov 0   ;;  %s656_s13 = smov 0   ;;  %s710_s0 = inlined_call_operand.vmem [shape: bf16[8,8,8], index: 0, kind: input, shape index: {}]   ;;  %s711_s1 = inlined_call_operand.vmem [shape: bf16[8,8,8], index: 1, kind: input, shape index: {}]   ;;  %s712_s2 = inlined_call_operand.vmem [shape: bf16[8,8,8], index: 2, kind: input, shape index: {}]   ;;  %s713_s3 = inlined_call_operand.vmem [shape: bf16[8,8,8], index: 3, kind: output, shape index: {}]  }
   0x1   :  { %s658_s14 = smov 0  }
   0x2 LB: > { %s32_s15 = sadd.s32 1, %s624_s13  ;;  %p545_p0 = scmp.ge.s32.totalorder %s628_s14, 1  ;;  %s628_s14 = sphi %s658_s14, %s13_s14   ;;  %s624_s13 = sphi %s656_s13, %s715_s13   ;;  %s620_s12 = sphi %s654_s12, %s714_s12  }
   0x3   : > { %p34_p1 = scmp.ge.s32.totalorder %s32_s15, 8  ;;  %p190_p2 = scmp.lt.s32.totalorder %s628_s14, 9 }
   0x5   : > { %s717_s15 = smov (%p34_p1, %s32_s15), 0  ;;  %p191_p3 = pnand %p545_p0, %p190_p2 }
   0x6   : > { %p232_p4 = scmp.lt.s32.totalorder (!%p191_p3), %s620_s12, 7 }
   0x7   : > { %194 = sbr.rel (%p191_p3) target bundleno = 795 (0x31b), region = 32 }
   0xc   : > { %vm268_vm0 = vcmask 64512   ;;  %v630_v0 = vmov 0.0   ;;  %vm631_vm1 = vmmov 0   ;;  %s719_s12 = smov (!%p232_p4, %s620_s12), 7  ;;  %vm265_vm2 = vcmask 7168  }
   0xd   : > { %558 = vmatprep.subr.bf16.mxu0 %v630_v0  ;;  %269 = vst.msk [vmem:[#allocation4] sm:$0xff] %vm268_vm0, %v630_v0  ;;  %560 = vmatprep.mubr.msk.bf16.mxu0 %vm631_vm1, %v630_v0  ;;  %s673_s16 = sshll.u32 %s719_s12, 2  ;;  %v632_v4 = vmov -inf   ;;  %v327_v5 = vlaneseq  ;;  %v633_v16 = vmov 0   ;;  %vm372_vm4 = vcmask 1043456  }
   0xe   : > { %564 = vmatprep.subr.bf16.mxu1 %v630_v0  ;;  %566 = vmatprep.mubr.msk.bf16.mxu1 %vm631_vm1, %v630_v0  ;;  %s245_s19 = scalar_lea.vmem %s711_s1, %s673_s16  ;;  %s238_s22 = scalar_lea.vmem %s710_s0, %s673_s16  ;;  %266 = vst.msk [vmem:[#allocation2] sm:$0xff] %vm265_vm2, %v632_v4  ;;  %267 = vst.msk [vmem:[#allocation3] sm:$0xff] %vm265_vm2, %v630_v0  ;;  %vm432_vm5 = vcmask 60416  }
   0xf   : > { %v278_v1 = vld [vmem:[%s245_s19] sm:$0xf]  ;;  %v328_v6 = vshrl.u32 %v327_v5, 7  ;;  %v330_v7 = vand.u32 127, %v327_v5  ;;  %598 = vset.pattern.permute.xlu0 %v633_v16  ;;  %599 = vset.pattern.permute.xlu1 %v633_v16  ;;  %s252_s25 = scalar_lea.vmem %s712_s2, %s673_s16  ;;  %s259_s28 = scalar_lea.vmem %s713_s3, %s673_s16 }
  0x10   : > { %v284_v2 = vsel %vm268_vm0, %v278_v1, 0  ;;  %v277_v3 = vld [vmem:[%s238_s22] sm:$0xf] }
  0x11   : > { %559 = vmatpush3.bf16.xpose.msra.mxu0 %v284_v2  ;;  %v331_v8 = vsub.s32 %v328_v6, %v330_v7  ;;  %v368_v21 = vld [vmem:[%s252_s25] sm:$0xf] }
  0x12   : > { %v374_v22 = vsel %vm372_vm4, %v368_v21, 0 }
  0x13   : > { %vm334_vm3 = vcmp.ge.s32.totalorder %v331_v8, 0  ;;  %565 = vmatpush3.bf16.msra.mxu1 %v374_v22 }
  0x14   : > { %v360_v37 = vld [vmem:[#allocation4] sm:$0xff] }
  0x15   : > { %v336_v17 = vld [vmem:[#allocation2] sm:$0xff]  ;;  %v352_v31 = vld [vmem:[#allocation3] sm:$0xff] }
  0x18   : > { %561 = vmatmul.mubr.msk.bf16.vlgmr.msra.gmra.mxu0 %vm268_vm0, %v277_v3 }
  0xd8   : > { %v320_v9 = vpop.f32.mrf.mxu0 }
  0xd9   : > { %v326_v10 = vmul.f32 0.35355338, %v320_v9 }
  0xda   : > { %v562_v11 = vpop.f32.mrf.mxu0 }
  0xdb   : > { %v335_v12 = vsel %vm334_vm3, %v326_v10, -1e+30 }
  0xdc   : > { %v323_v13 = vpop.f32.mrf.mxu0  ;;  %v337_v14 = vsel %vm268_vm0, %v335_v12, -inf }
  0xdd   : > { %338 = vmax.xlane.f32.xlu0 %v337_v14 }
  0xde   : > { %v563_v15 = vpop.f32.mrf.mxu0 }
 0x166   : > { %v339_v18 = vpop.xlane.xlu0 %338 }
 0x167   : > { %v340_v19 = vmax.f32 %v336_v17, %v339_v18 }
 0x169   : > { %v341_v20 = vsub.f32 %v336_v17, %v340_v19  ;;  %418 = vst.msk [vmem:[#allocation2] sm:$0xff] %vm265_vm2, %v340_v19  ;;  %346 = vperm.xlu0 %598, %v340_v19  }
 0x16b   : > { %v342_v27 = vmul.f32 1.442695, %v341_v20 }
 0x1e4   : > { %v347_v23 = vpop.permute.xlu0 %346 }
 0x1e5   : > { %v349_v24 = vsub.f32 %v335_v12, %v347_v23 }
 0x1e7   : > { %v350_v25 = vmul.f32 1.442695, %v349_v24 }
 0x1e9   : > { %600 = vpow2.f32 %v350_v25 }
 0x1ea   : > { %602 = vpow2.f32 %v342_v27 }
 0x1f6   : > { %v601_v26 = vpop.eup %600 }
 0x1f7   : > { %v354_v28 = vsel %vm268_vm0, %v601_v26, 0.0  ;;  %v367_v29 = vpack.c.bf16 %v601_v26, %v601_v26  ;;  %v603_v30 = vpop.eup %602 }
 0x1f8   : > { %355 = vadd.xlane.f32.xlu1 %v354_v28  ;;  %v353_v32 = vmul.f32 %v603_v30, %v352_v31 }
 0x1f9   : > { %567 = vmatmul.mubr.msk.bf16.vlgmr.msra.gmra.mxu1 %vm268_vm0, %v367_v29 }
 0x209   : > { %363 = vperm.xlu1 %599, %v603_v30  }
 0x281   : > { %v356_v33 = vpop.xlane.xlu1 %355 }
 0x282   : > { %v357_v34 = vadd.f32 %v356_v33, %v353_v32 }
 0x284   : > { %359 = vst.msk [vmem:[#allocation3] sm:$0xff] %vm265_vm2, %v357_v34 }
 0x285   : > { %v364_v38 = vpop.permute.xlu1 %363 }
 0x286   : > { %v366_v39 = vmul.f32 %v364_v38, %v360_v37 }
 0x28b   : > { %v422_v35 = vld [vmem:[#allocation3] sm:$0xff] }
 0x28c   : > { %604 = vrcp.f32 %v422_v35 }
 0x299   : > { %v605_v36 = vpop.eup %604 }
 0x29a   : > { %427 = vperm.xlu1 %599, %v605_v36  }
 0x2b9   : > { %v410_v40 = vpop.f32.mrf.mxu1 }
 0x2ba   : > { %v416_v41 = vadd.f32 %v410_v40, %v366_v39 }
 0x2bb   : > { %v568_v42 = vpop.f32.mrf.mxu1 }
 0x2bc   : > { %417 = vst.msk [vmem:[#allocation4] sm:$0xff] %vm268_vm0, %v416_v41 }
 0x2bd   : > { %v413_v43 = vpop.f32.mrf.mxu1 }
 0x2bf   : > { %v569_v44 = vpop.f32.mrf.mxu1 }
 0x2c3   : > { %v424_v45 = vld [vmem:[#allocation4] sm:$0xff] }
 0x315   : > { %v428_v46 = vpop.permute.xlu1 %427 }
 0x316   : > { %v430_v47 = vmul.f32 %v428_v46, %v424_v45 }
 0x318   : > { %v431_v48 = vpack.c.bf16 %v430_v47, %v430_v47 }
 0x31a   : > { %433 = vst.msk [vmem:[%s259_s28] sm:$0xf] %vm432_vm5, %v431_v48 }
 0x31b PF: > { %s13_s14 = sadd.s32 1, %s628_s14   ;;  %s714_s12 = smov %s624_s13 }
 0x31c   : > { %p10_p5 = scmp.ge.s32.totalorder %s13_s14, 10   ;;  %s715_s13 = smov %s717_s15 }
 0x31e   :  { %12 = sbr.rel (!%p10_p5) target bundleno = 2 (0x2), region = 80 }

// kernel: _gpt_forward_impl.11
= control target key start
LH: loop header
LB: loop body
LE: loop exit
PB: predicated region body
PF: predicated region fallthrough
CT: control target
= control target key end

     0   :  { %vm27_vm0 = vcmask 261120   ;;  %v209_v15 = vmov 0.0   ;;  %vm210_vm1 = vmmov 0   ;;  %vm81_vm2 = vcmask 257024   ;;  %s273_s0 = inlined_call_operand.vmem [shape: f32[16,32], index: 0, kind: input, shape index: {}]   ;;  %s274_s1 = inlined_call_operand.vmem [shape: bf16[32,96], index: 1, kind: input, shape index: {}]   ;;  %s275_s2 = inlined_call_operand.vmem [shape: f32[1,32], index: 2, kind: input, shape index: {}]   ;;  %s276_s3 = inlined_call_operand.vmem [shape: f32[1,32], index: 3, kind: input, shape index: {}]   ;;  %s277_s4 = inlined_call_operand.vmem [shape: f32[1,96], index: 4, kind: input, shape index: {}]   ;;  %s278_s5 = inlined_call_operand.vmem [shape: bf16[16,96], index: 5, kind: output, shape index: {}]  }
   0x1   :  { %v25_v0 = vld [vmem:[%s273_s0] sm:$0xff]  ;;  %v26_v1 = vld [vmem:[%s273_s0 + $0x8] sm:$0xff]  ;;  %192 = vmatprep.subr.bf16.mxu0 %v209_v15  ;;  %196 = vmatprep.mubr.msk.bf16.mxu0 %vm210_vm1, %v209_v15  ;;  %vm167_vm3 = vcmask 781312  }
   0x2   :  { %v28_v2 = vsel %vm27_vm0, %v25_v0, 0.0  ;;  %v31_v3 = vsel %vm27_vm0, %v26_v1, 0.0  ;;  %v202_v14 = vld [vmem:[%s274_s1 + $0x8] sm:$0xff]   ;;  %v203_v16 = vld [vmem:[%s274_s1] sm:$0xff]  }
   0x3   :  { %29 = vadd.xlane.f32.xlu0 %v28_v2  ;;  %193 = vmatpush3.bf16.msra.mxu0 %v202_v14  ;;  %v174_v24 = vld [vmem:[%s275_s2] ss:$0 sm:$0xff] }
   0x4   :  { %194 = vmatprep.subr.bf16.mxu0 %v209_v15  ;;  %v175_v26 = vld [vmem:[%s276_s3] ss:$0 sm:$0xff] }
   0x5   :  { %v178_v36 = vld [vmem:[%s277_s4] ss:$0 sm:$0xff] }
   0x7   :  { %32 = vadd.xlane.f32.xlu0 %v31_v3  ;;  %195 = vmatpush3.bf16.msra.mxu0 %v203_v16 }
  0x8c   :  { %v30_v4 = vpop.xlane.xlu0 %29 }
  0x8d   :  { %v35_v5 = vmul.f32 0.03125, %v30_v4 }
  0x8f   :  { %v37_v6 = vsub.f32 %v25_v0, %v35_v5 }
  0x90   :  { %v33_v7 = vpop.xlane.xlu0 %32 }
  0x91   :  { %v36_v8 = vmul.f32 0.03125, %v33_v7  ;;  %v39_v9 = vmul.f32 %v37_v6, %v37_v6 }
  0x93   :  { %v38_v10 = vsub.f32 %v26_v1, %v36_v8  ;;  %v41_v11 = vsel %vm27_vm0, %v39_v9, 0.0 }
  0x94   :  { %42 = vadd.xlane.f32.xlu1 %v41_v11 }
  0x95   :  { %v40_v12 = vmul.f32 %v38_v10, %v38_v10 }
  0x97   :  { %v44_v13 = vsel %vm27_vm0, %v40_v12, 0.0 }
  0x98   :  { %45 = vadd.xlane.f32.xlu1 %v44_v13 }
 0x11d   :  { %v43_v17 = vpop.xlane.xlu1 %42 }
 0x11e   :  { %v47_v18 = vmul.f32 0.03125, %v43_v17 }
 0x120   :  { %v49_v19 = vadd.f32 1e-05, %v47_v18 }
 0x121   :  { %v46_v20 = vpop.xlane.xlu1 %45 }
 0x122   :  { %205 = vrsqrt.f32 %v49_v19  ;;  %v48_v21 = vmul.f32 0.03125, %v46_v20 }
 0x124   :  { %v50_v22 = vadd.f32 1e-05, %v48_v21 }
 0x126   :  { %207 = vrsqrt.f32 %v50_v22 }
 0x12f   :  { %v206_v23 = vpop.eup %205 }
 0x130   :  { %v53_v25 = vmul.f32 %v206_v23, %v37_v6 }
 0x132   :  { %v62_v27 = vmul.f32 %v174_v24, %v53_v25 }
 0x133   :  { %v208_v28 = vpop.eup %207 }
 0x134   :  { %v71_v29 = vadd.f32 %v175_v26, %v62_v27  ;;  %v54_v30 = vmul.f32 %v208_v28, %v38_v10 }
 0x136   :  { %v185_v31 = vpack.c.bf16 %v71_v29, %v71_v29  ;;  %v63_v32 = vmul.f32 %v174_v24, %v54_v30 }
 0x138   :  { %82 = vst.msk [vmem:[#allocation2] sm:$0xf] %vm81_vm2, %v185_v31  ;;  %v72_v33 = vadd.f32 %v175_v26, %v63_v32 }
 0x13a   :  { %v186_v34 = vpack.c.bf16 %v72_v33, %v72_v33 }
 0x13c   :  { %83 = vst.msk [vmem:[#allocation2 + $0x4] sm:$0xf] %vm81_vm2, %v186_v34 }
 0x143   :  { %v204_v35 = vld [vmem:[#allocation2] sm:$0xff]  }
 0x144   :  { %197 = vmatmul.mubr.msk.bf16.vlgmr.msra.gmra.mxu0 %vm27_vm0, %v204_v35 }
 0x204   :  { %v152_v37 = vpop.f32.mrf.mxu0 }
 0x205   :  { %v153_v38 = vadd.f32 %v178_v36, %v152_v37 }
 0x206   :  { %v198_v39 = vpop.f32.mrf.mxu0 }
 0x207   :  { %v187_v40 = vpack.c.bf16 %v153_v38, %v153_v38 }
 0x208   :  { %v155_v41 = vpop.f32.mrf.mxu0 }
 0x209   :  { %168 = vst.msk [vmem:[%s278_s5] sm:$0xf] %vm167_vm3, %v187_v40  ;;  %v156_v42 = vadd.f32 %v178_v36, %v155_v41 }
 0x20a   :  { %v199_v43 = vpop.f32.mrf.mxu0 }
 0x20b   :  { %v188_v44 = vpack.c.bf16 %v156_v42, %v156_v42 }
 0x20d   :  { %169 = vst.msk [vmem:[%s278_s5 + $0x4] sm:$0xf] %vm167_vm3, %v188_v44 }

// kernel: _gpt_forward_impl.14
= control target key start
LH: loop header
LB: loop body
LE: loop exit
PB: predicated region body
PF: predicated region fallthrough
CT: control target
= control target key end

     0   :  { %vm27_vm0 = vcmask 261120   ;;  %v227_v15 = vmov 0.0   ;;  %vm228_vm1 = vmmov 0   ;;  %vm81_vm2 = vcmask 257024   ;;  %s288_s0 = inlined_call_operand.vmem [shape: f32[16,32], index: 0, kind: input, shape index: {}]   ;;  %s289_s1 = inlined_call_operand.vmem [shape: bf16[32,128], index: 1, kind: input, shape index: {}]   ;;  %s290_s2 = inlined_call_operand.vmem [shape: f32[1,32], index: 2, kind: input, shape index: {}]   ;;  %s291_s3 = inlined_call_operand.vmem [shape: f32[1,32], index: 3, kind: input, shape index: {}]   ;;  %s292_s4 = inlined_call_operand.vmem [shape: f32[1,128], index: 4, kind: input, shape index: {}]   ;;  %s293_s5 = inlined_call_operand.vmem [shape: bf16[16,128], index: 5, kind: output, shape index: {}]  }
   0x1   :  { %v25_v0 = vld [vmem:[%s288_s0] sm:$0xff]  ;;  %v26_v1 = vld [vmem:[%s288_s0 + $0x8] sm:$0xff]  ;;  %206 = vmatprep.subr.bf16.mxu0 %v227_v15  ;;  %210 = vmatprep.mubr.msk.bf16.mxu0 %vm228_vm1, %v227_v15 }
   0x2   :  { %v28_v2 = vsel %vm27_vm0, %v25_v0, 0.0  ;;  %v31_v3 = vsel %vm27_vm0, %v26_v1, 0.0  ;;  %v216_v14 = vld [vmem:[%s289_s1 + $0x8] sm:$0xff]   ;;  %v217_v16 = vld [vmem:[%s289_s1] sm:$0xff]  }
   0x3   :  { %29 = vadd.xlane.f32.xlu0 %v28_v2  ;;  %207 = vmatpush3.bf16.msra.mxu0 %v216_v14  ;;  %v183_v24 = vld [vmem:[%s290_s2] ss:$0 sm:$0xff] }
   0x4   :  { %208 = vmatprep.subr.bf16.mxu0 %v227_v15  ;;  %v184_v26 = vld [vmem:[%s291_s3] ss:$0 sm:$0xff] }
   0x5   :  { %v187_v36 = vld [vmem:[%s292_s4] ss:$0 sm:$0xff] }
   0x7   :  { %32 = vadd.xlane.f32.xlu0 %v31_v3  ;;  %209 = vmatpush3.bf16.msra.mxu0 %v217_v16 }
  0x8c   :  { %v30_v4 = vpop.xlane.xlu0 %29 }
  0x8d   :  { %v35_v5 = vmul.f32 0.03125, %v30_v4 }
  0x8f   :  { %v37_v6 = vsub.f32 %v25_v0, %v35_v5 }
  0x90   :  { %v33_v7 = vpop.xlane.xlu0 %32 }
  0x91   :  { %v36_v8 = vmul.f32 0.03125, %v33_v7  ;;  %v39_v9 = vmul.f32 %v37_v6, %v37_v6 }
  0x93   :  { %v38_v10 = vsub.f32 %v26_v1, %v36_v8  ;;  %v41_v11 = vsel %vm27_vm0, %v39_v9, 0.0 }
  0x94   :  { %42 = vadd.xlane.f32.xlu1 %v41_v11 }
  0x95   :  { %v40_v12 = vmul.f32 %v38_v10, %v38_v10 }
  0x97   :  { %v44_v13 = vsel %vm27_vm0, %v40_v12, 0.0 }
  0x98   :  { %45 = vadd.xlane.f32.xlu1 %v44_v13 }
 0x11d   :  { %v43_v17 = vpop.xlane.xlu1 %42 }
 0x11e   :  { %v47_v18 = vmul.f32 0.03125, %v43_v17 }
 0x120   :  { %v49_v19 = vadd.f32 1e-05, %v47_v18 }
 0x121   :  { %v46_v20 = vpop.xlane.xlu1 %45 }
 0x122   :  { %219 = vrsqrt.f32 %v49_v19  ;;  %v48_v21 = vmul.f32 0.03125, %v46_v20 }
 0x124   :  { %v50_v22 = vadd.f32 1e-05, %v48_v21 }
 0x126   :  { %221 = vrsqrt.f32 %v50_v22 }
 0x12f   :  { %v220_v23 = vpop.eup %219 }
 0x130   :  { %v53_v25 = vmul.f32 %v220_v23, %v37_v6 }
 0x132   :  { %v62_v27 = vmul.f32 %v183_v24, %v53_v25 }
 0x133   :  { %v222_v28 = vpop.eup %221 }
 0x134   :  { %v71_v29 = vadd.f32 %v184_v26, %v62_v27  ;;  %v54_v30 = vmul.f32 %v222_v28, %v38_v10 }
 0x136   :  { %v194_v31 = vpack.c.bf16 %v71_v29, %v71_v29  ;;  %v63_v32 = vmul.f32 %v183_v24, %v54_v30 }
 0x138   :  { %82 = vst.msk [vmem:[#allocation2] sm:$0xf] %vm81_vm2, %v194_v31  ;;  %v72_v33 = vadd.f32 %v184_v26, %v63_v32 }
 0x13a   :  { %v195_v34 = vpack.c.bf16 %v72_v33, %v72_v33 }
 0x13c   :  { %83 = vst.msk [vmem:[#allocation2 + $0x4] sm:$0xf] %vm81_vm2, %v195_v34 }
 0x143   :  { %v218_v35 = vld [vmem:[#allocation2] sm:$0xff]  }
 0x144   :  { %211 = vmatmul.mubr.msk.bf16.vlgmr.msra.gmra.mxu0 %vm27_vm0, %v218_v35 }
 0x204   :  { %v152_v37 = vpop.f32.mrf.mxu0 }
 0x205   :  { %v153_v38 = vadd.f32 %v187_v36, %v152_v37 }
 0x206   :  { %v212_v39 = vpop.f32.mrf.mxu0 }
 0x207   :  { %v161_v40 = vmul.f32 0.70710677, %v153_v38  ;;  %v159_v48 = vmul.f32 0.5, %v153_v38 }
 0x208   :  { %v155_v41 = vpop.f32.mrf.mxu0 }
 0x209   :  { %223 = verf.f32 %v161_v40  ;;  %v156_v42 = vadd.f32 %v187_v36, %v155_v41 }
 0x20a   :  { %v213_v43 = vpop.f32.mrf.mxu0 }
 0x20b   :  { %v162_v44 = vmul.f32 0.70710677, %v156_v42  ;;  %v160_v49 = vmul.f32 0.5, %v156_v42 }
 0x20d   :  { %225 = verf.f32 %v162_v44 }
 0x216   :  { %v224_v45 = vpop.eup %223 }
 0x217   :  { %v165_v46 = vadd.f32 1.0, %v224_v45 }
 0x219   :  { %v167_v51 = vmul.f32 %v165_v46, %v159_v48 }
 0x21a   :  { %v226_v47 = vpop.eup %225 }
 0x21b   :  { %v166_v50 = vadd.f32 1.0, %v226_v47 }
 0x21d   :  { %v168_v52 = vmul.f32 %v166_v50, %v160_v49 }
 0x21f   :  { %v201_v53 = vpack.c.bf16 %v168_v52, %v167_v51 }
 0x221   :  { %202 = vst [vmem:[%s293_s5] sm:$0xff] %v201_v53  }

// kernel: _gpt_forward_impl.13
= control target key start
LH: loop header
LB: loop body
LE: loop exit
PB: predicated region body
PF: predicated region fallthrough
CT: control target
= control target key end

     0   :  { %vm22_vm0 = vcmask 261120   ;;  %v144_v0 = vmov 0.0   ;;  %vm145_vm1 = vmmov 0   ;;  %s202_s1 = inlined_call_operand.vmem [shape: bf16[32,32], index: 1, kind: input, shape index: {}]   ;;  %s203_s0 = inlined_call_operand.vmem [shape: bf16[16,32], index: 0, kind: input, shape index: {}]   ;;  %s204_s2 = inlined_call_operand.vmem [shape: f32[1,32], index: 2, kind: input, shape index: {}]   ;;  %s205_s3 = inlined_call_operand.vmem [shape: f32[16,32], index: 3, kind: input, shape index: {}]   ;;  %s206_s4 = inlined_call_operand.vmem [shape: f32[16,32], index: 4, kind: output, shape index: {}]  }
   0x1   :  { %131 = vmatprep.subr.bf16.mxu0 %v144_v0  ;;  %v141_v1 = vld [vmem:[%s202_s1 + $0x8] sm:$0xff]   ;;  %135 = vmatprep.mubr.msk.bf16.mxu0 %vm145_vm1, %v144_v0  ;;  %23 = vst.msk [vmem:[#allocation2] sm:$0xff] %vm22_vm0, %v144_v0  ;;  %24 = vst.msk [vmem:[#allocation2 + $0x8] sm:$0xff] %vm22_vm0, %v144_v0  ;;  %v142_v2 = vld [vmem:[%s202_s1] sm:$0xff]  }
   0x2   :  { %132 = vmatpush3.bf16.msra.mxu0 %v141_v1  ;;  %v143_v3 = vld [vmem:[%s203_s0] sm:$0xff]   ;;  %v114_v18 = vld [vmem:[%s205_s3 + $0x8] sm:$0xff] }
   0x3   :  { %133 = vmatprep.subr.bf16.mxu0 %v144_v0  ;;  %v127_v12 = vld [vmem:[%s204_s2] ss:$0 sm:$0xff] }
   0x4   :  { %v113_v14 = vld [vmem:[%s205_s3] sm:$0xff] }
   0x6   :  { %134 = vmatpush3.bf16.msra.mxu0 %v142_v2 }
   0x8   :  { %v25_v4 = vld [vmem:[#allocation2] sm:$0xff]  ;;  %v26_v8 = vld [vmem:[#allocation2 + $0x8] sm:$0xff] }
   0x9   :  { %136 = vmatmul.mubr.msk.bf16.vlgmr.msra.gmra.mxu0 %vm22_vm0, %v143_v3 }
  0xc9   :  { %v88_v5 = vpop.f32.mrf.mxu0 }
  0xca   :  { %v95_v6 = vadd.f32 %v88_v5, %v25_v4 }
  0xcb   :  { %v137_v7 = vpop.f32.mrf.mxu0 }
  0xcc   :  { %97 = vst.msk [vmem:[#allocation2] sm:$0xff] %vm22_vm0, %v95_v6 }
  0xcd   :  { %v91_v9 = vpop.f32.mrf.mxu0 }
  0xce   :  { %v96_v10 = vadd.f32 %v91_v9, %v26_v8 }
  0xcf   :  { %v138_v11 = vpop.f32.mrf.mxu0 }
  0xd0   :  { %98 = vst.msk [vmem:[#allocation2 + $0x8] sm:$0xff] %vm22_vm0, %v96_v10 }
  0xd3   :  { %v102_v13 = vld [vmem:[#allocation2] sm:$0xff] }
  0xd4   :  { %v111_v15 = vadd.f32 %v127_v12, %v102_v13 }
  0xd6   :  { %v115_v16 = vadd.f32 %v113_v14, %v111_v15 }
  0xd7   :  { %v103_v17 = vld [vmem:[#allocation2 + $0x8] sm:$0xff] }
  0xd8   :  { %117 = vst.msk [vmem:[%s206_s4] sm:$0xff] %vm22_vm0, %v115_v16  ;;  %v112_v19 = vadd.f32 %v127_v12, %v103_v17 }
  0xda   :  { %v116_v20 = vadd.f32 %v114_v18, %v112_v19 }
  0xdc   :  { %118 = vst.msk [vmem:[%s206_s4 + $0x8] sm:$0xff] %vm22_vm0, %v116_v20 }

// kernel: _gpt_forward_impl.15
= control target key start
LH: loop header
LB: loop body
LE: loop exit
PB: predicated region body
PF: predicated region fallthrough
CT: control target
= control target key end

     0   :  { %vm22_vm0 = vcmask 261120   ;;  %v219_v0 = vmov 0.0   ;;  %vm220_vm1 = vmmov 0   ;;  %s294_s1 = inlined_call_operand.vmem [shape: bf16[128,32], index: 1, kind: input, shape index: {}]   ;;  %s295_s0 = inlined_call_operand.vmem [shape: bf16[16,128], index: 0, kind: input, shape index: {}]   ;;  %s296_s2 = inlined_call_operand.vmem [shape: f32[1,32], index: 2, kind: input, shape index: {}]   ;;  %s297_s3 = inlined_call_operand.vmem [shape: f32[16,32], index: 3, kind: input, shape index: {}]   ;;  %s298_s4 = inlined_call_operand.vmem [shape: f32[16,32], index: 4, kind: output, shape index: {}]  }
   0x1   :  { %188 = vmatprep.subr.bf16.mxu0 %v219_v0  ;;  %v210_v1 = vld [vmem:[%s294_s1 + $0x38] sm:$0xff]   ;;  %204 = vmatprep.mubr.msk.bf16.mxu0 %vm220_vm1, %v219_v0  ;;  %23 = vst.msk [vmem:[#allocation2] sm:$0xff] %vm22_vm0, %v219_v0  ;;  %24 = vst.msk [vmem:[#allocation2 + $0x8] sm:$0xff] %vm22_vm0, %v219_v0  ;;  %v211_v2 = vld [vmem:[%s294_s1 + $0x30] sm:$0xff]  }
   0x2   :  { %189 = vmatpush3.bf16.msra.mxu0 %v210_v1  ;;  %v212_v3 = vld [vmem:[%s294_s1 + $0x28] sm:$0xff]   ;;  %v213_v4 = vld [vmem:[%s294_s1 + $0x20] sm:$0xff]   ;;  %v214_v5 = vld [vmem:[%s294_s1 + $0x18] sm:$0xff]  }
   0x3   :  { %190 = vmatprep.subr.bf16.mxu0 %v219_v0  ;;  %v215_v6 = vld [vmem:[%s294_s1 + $0x10] sm:$0xff]   ;;  %v216_v7 = vld [vmem:[%s294_s1 + $0x8] sm:$0xff]   ;;  %v217_v8 = vld [vmem:[%s294_s1] sm:$0xff]  }
   0x4   :  { %v218_v9 = vld [vmem:[%s295_s0] sm:$0xff]   ;;  %v160_v23 = vld [vmem:[%s297_s3 + $0x8] sm:$0xff] }
   0x5   :  { %v178_v18 = vld [vmem:[%s296_s2] ss:$0 sm:$0xff] }
   0x6   :  { %191 = vmatpush3.bf16.msra.mxu0 %v211_v2  ;;  %v159_v20 = vld [vmem:[%s297_s3] sm:$0xff] }
   0x7   :  { %192 = vmatprep.subr.bf16.mxu0 %v219_v0 }
   0x8   :  { %v25_v10 = vld [vmem:[#allocation2] sm:$0xff]  ;;  %v26_v14 = vld [vmem:[#allocation2 + $0x8] sm:$0xff] }
   0xa   :  { %193 = vmatpush3.bf16.msra.mxu0 %v212_v3 }
   0xb   :  { %194 = vmatprep.subr.bf16.mxu0 %v219_v0 }
   0xe   :  { %195 = vmatpush3.bf16.msra.mxu0 %v213_v4 }
   0xf   :  { %196 = vmatprep.subr.bf16.mxu0 %v219_v0 }
  0x12   :  { %197 = vmatpush3.bf16.msra.mxu0 %v214_v5 }
  0x13   :  { %198 = vmatprep.subr.bf16.mxu0 %v219_v0 }
  0x16   :  { %199 = vmatpush3.bf16.msra.mxu0 %v215_v6 }
  0x17   :  { %200 = vmatprep.subr.bf16.mxu0 %v219_v0 }
  0x1a   :  { %201 = vmatpush3.bf16.msra.mxu0 %v216_v7 }
  0x1b   :  { %202 = vmatprep.subr.bf16.mxu0 %v219_v0 }
  0x1e   :  { %203 = vmatpush3.bf16.msra.mxu0 %v217_v8 }
  0x21   :  { %205 = vmatmul.mubr.bf16.vlgmr.msra.gmra.mxu0 %v218_v9 }
  0xe1   :  { %v133_v11 = vpop.f32.mrf.mxu0 }
  0xe2   :  { %v140_v12 = vadd.f32 %v133_v11, %v25_v10 }
  0xe3   :  { %v206_v13 = vpop.f32.mrf.mxu0 }
  0xe4   :  { %143 = vst.msk [vmem:[#allocation2] sm:$0xff] %vm22_vm0, %v140_v12 }
  0xe5   :  { %v136_v15 = vpop.f32.mrf.mxu0 }
  0xe6   :  { %v141_v16 = vadd.f32 %v136_v15, %v26_v14 }
  0xe7   :  { %v207_v17 = vpop.f32.mrf.mxu0 }
  0xe8   :  { %144 = vst.msk [vmem:[#allocation2 + $0x8] sm:$0xff] %vm22_vm0, %v141_v16 }
  0xeb   :  { %v148_v19 = vld [vmem:[#allocation2] sm:$0xff] }
  0xec   :  { %v157_v21 = vadd.f32 %v178_v18, %v148_v19 }
  0xee   :  { %v161_v22 = vadd.f32 %v159_v20, %v157_v21 }
  0xef   :  { %v149_v24 = vld [vmem:[#allocation2 + $0x8] sm:$0xff] }
  0xf0   :  { %163 = vst.msk [vmem:[%s298_s4] sm:$0xff] %vm22_vm0, %v161_v22  ;;  %v158_v25 = vadd.f32 %v178_v18, %v149_v24 }
  0xf2   :  { %v162_v26 = vadd.f32 %v160_v23, %v158_v25 }
  0xf4   :  { %164 = vst.msk [vmem:[%s298_s4 + $0x8] sm:$0xff] %vm22_vm0, %v162_v26 }

// kernel: _gpt_forward_impl.21
= control target key start
LH: loop header
LB: loop body
LE: loop exit
PB: predicated region body
PF: predicated region fallthrough
CT: control target
= control target key end

     0   :  { %vm23_vm0 = vcmask 254976   ;;  %s238_s0 = inlined_call_operand.vmem [shape: f32[2,32], index: 0, kind: input, shape index: {}]   ;;  %s239_s1 = inlined_call_operand.vmem [shape: bf16[32,64], index: 1, kind: input, shape index: {}]   ;;  %s240_s2 = inlined_call_operand.vmem [shape: f32[1,32], index: 2, kind: input, shape index: {}]   ;;  %s241_s3 = inlined_call_operand.vmem [shape: f32[1,32], index: 3, kind: input, shape index: {}]   ;;  %s242_s4 = inlined_call_operand.vmem [shape: f32[1,64], index: 4, kind: input, shape index: {}]   ;;  %s243_s5 = inlined_call_operand.hbm [shape: f32[2,64], index: 5, kind: output, shape index: {}]  }
   0x1   :  { %v22_v0 = vld [vmem:[%s238_s0] sm:$0x3] }
   0x2   :  { %v24_v1 = vsel %vm23_vm0, %v22_v0, 0.0 }
   0x3   :  { %25 = vadd.xlane.f32.xlu0 %v24_v1 }
   0x4   :  { %10 = vsyncpa [#allocation3], 0  ;;  %v158_v7 = vld [vmem:[%s239_s1 + $0x8] sm:$0xff]   ;;  %v184_v8 = vmov 0.0   ;;  %vm185_vm1 = vmmov 0   ;;  %v159_v9 = vld [vmem:[%s239_s1] sm:$0xff]  }
   0x5   :  { %147 = vmatprep.subr.bf16.mxu0 %v184_v8  ;;  %151 = vmatprep.mubr.msk.bf16.mxu0 %vm185_vm1, %v184_v8  ;;  %v138_v14 = vld [vmem:[%s240_s2] ss:$0 sm:$0xff]  ;;  %vm78_vm2 = vcmask 261120   ;;  %s186_s28 = smov [#allocation2]   ;;  %vm122_vm3 = vcmask 517120  }
   0x6   :  { %148 = vmatpush3.bf16.msra.mxu0 %v158_v7  ;;  %v139_v16 = vld [vmem:[%s241_s3] ss:$0 sm:$0xff]  ;;  %s130_s29 = sshll.u32 %s186_s28, 4  ;;  %s131_s29 = int_to_ptr.vmem [resolvable:$true] %s130_s29 }
   0x7   :  { %149 = vmatprep.subr.bf16.mxu0 %v184_v8  ;;  %v140_v20 = vld [vmem:[%s242_s4] ss:$0 sm:$0xff]  ;;  %s162_s2 = scalar_lea.vmem %s131_s29, 32  ;;  %p167_p1 = scmp.lt.s32.totalorder %s131_s29, %s131_s29 }
   0x8   :  { %p163_p0 = scmp.ne.s32.totalorder %s131_s29, %s162_s2  ;;  %p168_p2 = scmp.lt.s32.totalorder %s162_s2, %s162_s2 }
   0xa   :  { %150 = vmatpush3.bf16.msra.mxu0 %v159_v9  ;;  %p169_p3 = por %p168_p2, %p167_p1 }
   0xc   :  { %p170_p4 = pnand %p169_p3, %p163_p0 }
  0x8c   :  { %v26_v2 = vpop.xlane.xlu0 %25 }
  0x8d   :  { %v28_v3 = vmul.f32 0.03125, %v26_v2 }
  0x8f   :  { %v29_v4 = vsub.f32 %v22_v0, %v28_v3 }
  0x91   :  { %v30_v5 = vmul.f32 %v29_v4, %v29_v4 }
  0x93   :  { %v31_v6 = vsel %vm23_vm0, %v30_v5, 0.0 }
  0x94   :  { %32 = vadd.xlane.f32.xlu0 %v31_v6 }
 0x11d   :  { %v33_v10 = vpop.xlane.xlu0 %32 }
 0x11e   :  { %v34_v11 = vmul.f32 0.03125, %v33_v10 }
 0x120   :  { %v35_v12 = vadd.f32 1e-05, %v34_v11 }
 0x122   :  { %160 = vrsqrt.f32 %v35_v12 }
 0x12f   :  { %v161_v13 = vpop.eup %160 }
 0x130   :  { %v37_v15 = vmul.f32 %v161_v13, %v29_v4 }
 0x132   :  { %v45_v17 = vmul.f32 %v138_v14, %v37_v15 }
 0x134   :  { %v53_v18 = vadd.f32 %v139_v16, %v45_v17 }
 0x136   :  { %v54_v19 = vpack.c.bf16 %v53_v18, %v53_v18 }
 0x138   :  { %152 = vmatmul.mubr.msk.bf16.vlgmr.msra.gmra.mxu0 %vm78_vm2, %v54_v19 }
 0x1f8   :  { %v116_v21 = vpop.f32.mrf.mxu0 }
 0x1f9   :  { %v117_v22 = vadd.f32 %v140_v20, %v116_v21 }
 0x1fa   :  { %v153_v23 = vpop.f32.mrf.mxu0 }
 0x1fb   :  { %123 = vst.msk [vmem:[#allocation2] sm:$0x3] %vm122_vm3, %v117_v22 }
 0x1fc   :  { %v119_v24 = vpop.f32.mrf.mxu0 }
 0x1fd   :  { %173 = shalt.err (!%p170_p4)
}
 0x1fe   :  { %133 = dma.vmem_to_hbm [thread:$0]  %s131_s29, 32, %s243_s5, [#allocation3]   ;;  %v154_v25 = vpop.f32.mrf.mxu0 }
 0x1ff   :  { %182 = dma.done.wait [#allocation3], 32  }
 0x200   :  { %183 = vsyncadd [#allocation3], 4294967264 }
 0x201   :  { %137 = vsyncpa [#allocation3], 1 }

</bundles_post_ra>
